<compile_context>
chip_gen: v7x
topology: tpu7x:2x2x1
jax: 0.10.0
libtpu: 0.0.40
codegen_flags: <defaults>
</compile_context>

<pallas_src>
import functools

import jax
import jax.numpy as jnp
from jax import lax
from jax.experimental import pallas as pl
from jax.experimental.pallas import tpu as pltpu


MXU_DTYPE = jnp.bfloat16   # MXU operand dtype (accumulation stays f32).
LEAKY_SLOPE = 0.01         # nn.LeakyReLU() default negative_slope.
BN_EPS = 1e-5
MAX_LANES = 2048           # cap on per-step lane width (NB * H * W).


# -----------------------------------------------------------------------------
# Fused kernel: (3x3 SAME conv -> BN shift -> LeakyReLU) x 2 for NB images,
# batch flattened onto the lane axis.  Channels on sublanes, pixels on lanes.
# -----------------------------------------------------------------------------
def _make_double_conv_kernel(H, W, NB, alpha):
    HW = H * W
    L = NB * HW

    def kernel(x_ref, w1_ref, w2_ref, b1_ref, b2_ref, o_ref):
        # x_ref : (NB, Cin, H*W) f32   NB images, channels on sublanes
        # w1_ref: (M, 9*Cin)     bf16  stage-1 weights (BN1 scale folded in)
        # w2_ref: (M, 9*M)       bf16  stage-2 grouped conv as block-diag, BN2 folded
        # b1_ref, b2_ref: (M, 1) f32   per-channel BN shifts
        # o_ref : (NB, M, H*W)   f32

        # Per-lane halo masks over the batch-flattened lane axis
        # (lane index = image*HW + y*W + x).  Built once per step, reused by both stages.
        col = lax.broadcasted_iota(jnp.int32, (1, L), 1)
        xc = col % W
        pix = col % HW
        ok_l = xc >= 1            # source column x-1 in bounds
        ok_r = xc <= W - 2        # source column x+1 in bounds
        ok_u = pix >= W           # source row    y-1 in bounds (also image boundary)
        ok_d = pix < HW - W       # source row    y+1 in bounds (also image boundary)

        def shift_lanes(a, s):
            # b[:, p] = a[:, p + s]; zero fill outside [0, L).  Every out-of-image read
            # (tile edges and image-to-image boundaries) is zeroed by the masks below.
            if s == 0:
                return a
            R = a.shape[0]
            z = jnp.zeros((R, abs(s)), a.dtype)
            if s > 0:
                return jnp.concatenate([a[:, s:], z], axis=1)
            return jnp.concatenate([z, a[:, :L + s]], axis=1)

        def im2col(a):
            # a: (R, L) -> (9*R, L); row-block order (dy, dx, r) matches an HWIO
            # (3, 3, R, M) weight reshaped to (9*R, M).
            pieces = []
            for dy in range(3):
                for dx in range(3):
                    s = (dy - 1) * W + (dx - 1)
                    p = shift_lanes(a, s)
                    m = None
                    if dy == 0:
                        m = ok_u
                    elif dy == 2:
                        m = ok_d
                    if dx == 0:
                        m = ok_l if m is None else jnp.logical_and(m, ok_l)
                    elif dx == 2:
                        m = ok_r if m is None else jnp.logical_and(m, ok_r)
                    if m is not None:
                        p = jnp.where(m, p, jnp.zeros_like(p))
                    pieces.append(p)
            return jnp.concatenate(pieces, axis=0)

        def conv_bn_act(a, w_ref, b_ref):
            # One conv3x3(pad=1) -> BN -> LeakyReLU stage as a single MXU dot:
            #   (M, 9R) @ (9R, L) -> (M, L), f32 accumulation.
            patches = im2col(a)
            acc = jnp.dot(w_ref[...], patches, preferred_element_type=jnp.float32)
            z = acc + b_ref[...]                    # (M, 1) broadcast along lanes
            return jnp.where(z > 0, z, alpha * z)   # LeakyReLU

        # Flatten the NB images of this step onto the lane axis (image-major order).
        if NB == 1:
            xb = x_ref[0].astype(MXU_DTYPE)                                  # (Cin, HW)
        else:
            xb = jnp.concatenate([x_ref[i].astype(MXU_DTYPE) for i in range(NB)],
                                 axis=-1)                                    # (Cin, L)

        mid = conv_bn_act(xb, w1_ref, b1_ref)                        # (M, L) f32
        out = conv_bn_act(mid.astype(MXU_DTYPE), w2_ref, b2_ref)     # (M, L) f32

        # Split the lane axis back into NB images (static, lane-aligned slices).
        for i in range(NB):
            o_ref[i] = out[:, i * HW:(i + 1) * HW].astype(o_ref.dtype)

    return kernel


# -----------------------------------------------------------------------------
# Parameter folding: channel expansion + BN (inference) + grouped-conv structure
# + chunk(...)[0] pruning -> two dense (M, 9*K) weights and (M, 1) shifts.
# -----------------------------------------------------------------------------
def _fold_global_gate_params(params, in_ch, channels):
    C = channels
    factor = C // in_ch
    keep = C * in_ch          # channels of chunk(...)[0]; also the only mid channels needed.

    g1, be1, m1, v1 = params["bn1"]
    g2, be2, m2, v2 = params["bn2"]
    s1 = g1 / jnp.sqrt(v1 + BN_EPS); sh1 = be1 - m1 * s1
    s2 = g2 / jnp.sqrt(v2 + BN_EPS); sh2 = be2 - m2 * s2

    # Stage 1: Conv2d(C, C*C, 3, pad=1, bias=False) on the channel-expanded input.
    # Only the first `keep` outputs feed chunk[0]; fold the expansion by summing the
    # weight taps of replicated input channels, and fold the BN1 scale.
    w1 = params["w1"][:, :, :, :keep]                        # (3,3,C,keep) HWIO
    w1 = w1.reshape(3, 3, factor, in_ch, keep).sum(axis=2)   # fold expand -> (3,3,in_ch,keep)
    w1 = w1 * s1[:keep]
    b1 = sh1[:keep]

    # Stage 2: GroupConv2d(C*C, C, 3, 1, 1, out_groups=C) == grouped conv with C groups
    # (C in-ch -> C out-ch each), expressed as a dense block-diagonal conv restricted to
    # the first `keep` in/out channels (groups 0 .. in_ch-1), with BN2 scale folded in.
    wg = params["w2"]                                        # (3,3,C,C*C) grouped HWIO
    w2 = jnp.zeros((3, 3, keep, keep), jnp.float32)
    for g in range(in_ch):
        w2 = w2.at[:, :, g * C:(g + 1) * C, g * C:(g + 1) * C].set(
            wg[:, :, :, g * C:(g + 1) * C])
    w2 = w2 * s2[:keep]
    b2 = sh2[:keep]

    # Kernel layout: (M, 9*K) with column order (dy, dx, k); biases as (M, 1).
    return {
        "w1": w1.reshape(9 * in_ch, keep).T.astype(MXU_DTYPE),
        "w2": w2.reshape(9 * keep, keep).T.astype(MXU_DTYPE),
        "b1": b1.reshape(keep, 1).astype(jnp.float32),
        "b2": b2.reshape(keep, 1).astype(jnp.float32),
    }


@functools.partial(jax.jit, static_argnums=(2,))
def global_gate_forward(x_nchw, kparams, channels):
    N, c, H, W = x_nchw.shape
    assert channels % c == 0, "input channels must divide the gate channels"
    keep = channels * c
    HW = H * W

    # Batch tile: NB images per grid step, flattened onto the lane axis in-kernel.
    NB = max(1, min(N, MAX_LANES // HW)) if HW <= MAX_LANES else 1
    while N % NB:
        NB -= 1

    xf = x_nchw.reshape(N, c, HW)                 # free reshape: NCHW consumed directly
    kernel = _make_double_conv_kernel(H, W, NB, LEAKY_SLOPE)

    out = pl.pallas_call(
        kernel,
        out_shape=jax.ShapeDtypeStruct((N, keep, HW), x_nchw.dtype),
        grid=(N // NB,),
        in_specs=[
            pl.BlockSpec((NB, c, HW), lambda t: (t, 0, 0)),
            pl.BlockSpec(kparams["w1"].shape, lambda t: (0, 0)),
            pl.BlockSpec(kparams["w2"].shape, lambda t: (0, 0)),
            pl.BlockSpec(kparams["b1"].shape, lambda t: (0, 0)),
            pl.BlockSpec(kparams["b2"].shape, lambda t: (0, 0)),
        ],
        out_specs=pl.BlockSpec((NB, keep, HW), lambda t: (t, 0, 0)),
        compiler_params=pltpu.CompilerParams(dimension_semantics=("parallel",)),
    )(xf, kparams["w1"], kparams["w2"], kparams["b1"], kparams["b2"])

    return out.reshape(N, keep, H, W)             # free reshape back to NCHW


# -----------------------------------------------------------------------------
# Pure-JAX f32 reference of the full GlobalGate forward (no folding, no pruning).
# -----------------------------------------------------------------------------
def _ref_global_gate(x_nchw, params, channels):
    C = channels
    b, c, h, w = x_nchw.shape
    factor = C // c
    keep = (C * C) // factor

    # view/expand/reshape channel expansion.
    xe = jnp.broadcast_to(x_nchw[:, None], (b, factor, c, h, w)).reshape(b, factor * c, h, w)

    def conv(x, wt, groups=1):
        return lax.conv_general_dilated(
            x, wt, window_strides=(1, 1), padding="SAME",
            dimension_numbers=("NCHW", "HWIO", "NCHW"),
            feature_group_count=groups)

    def bn(x, p):
        g, be, m, v = p
        s = g / jnp.sqrt(v + BN_EPS)
        return x * s[None, :, None, None] + (be - m * s)[None, :, None, None]

    def leaky(x):
        return jnp.where(x > 0, x, LEAKY_SLOPE * x)

    y = leaky(bn(conv(xe, params["w1"]), params["bn1"]))
    y = leaky(bn(conv(y, params["w2"], groups=C), params["bn2"]))
    return y[:, :keep]                            # torch.chunk(y, factor, dim=1)[0]


def make_params(key, channels):
    C = channels
    mid = C * C
    ks = jax.random.split(key, 6)

    # Conv weights in HWIO, Kaiming-ish scale, deterministic.
    w1 = jax.random.normal(ks[0], (3, 3, C, mid), jnp.float32) * (2.0 / (9 * C)) ** 0.5
    # Grouped conv weight (kh, kw, in_per_group=C, out_total=C*C).
    w2 = jax.random.normal(ks[1], (3, 3, C, mid), jnp.float32) * (2.0 / (9 * C)) ** 0.5

    def bn(kg, kb, n, mscale, vscale):
        gamma = 1.0 + 0.1 * jax.random.normal(kg, (n,), jnp.float32)
        beta = 0.1 * jax.random.normal(kb, (n,), jnp.float32)
        mean = mscale * jnp.arange(n, dtype=jnp.float32) / n
        var = 1.0 + vscale * jnp.arange(n, dtype=jnp.float32) / n
        return (gamma, beta, mean, var)

    return {"w1": w1, "w2": w2,
            "bn1": bn(ks[2], ks[3], mid, 0.5, 0.3),
            "bn2": bn(ks[4], ks[5], mid, 0.3, 0.5)}


if __name__ == "__main__":
    key = jax.random.PRNGKey(0)
    kx, kp = jax.random.split(key)

    # GlobalGate(channels=8) driven with a (2, 4, 16, 16) NCHW input (factor = 2).
    N, c, H, W = 2, 4, 16, 16
    channels = 8

    x = jax.random.normal(kx, (N, c, H, W), jnp.float32)
    params = make_params(kp, channels)
    kparams = _fold_global_gate_params(params, c, channels)

    out = jax.block_until_ready(global_gate_forward(x, kparams, channels))
    ref = jax.block_until_ready(_ref_global_gate(x, params, channels))

    assert out.shape == (N, channels * c, H, W), out.shape
    # bf16 MXU operands (f32 accumulation) -> looser tolerance than a pure-f32 kernel.
    max_err = float(jnp.max(jnp.abs(out - ref)))
    assert jnp.allclose(out, ref, rtol=5e-2, atol=5e-2), f"max abs err {max_err}"

    print("KERNEL_OK")
</pallas_src>

<mosaic_0001>
module attributes {stable_mosaic.version = 11 : i64} {
  func.func @kernel(%arg0: i32, %arg1: memref<2x4x256xf32, #tpu.memory_space<vmem>>, %arg2: memref<32x36xbf16, #tpu.memory_space<vmem>>, %arg3: memref<32x288xbf16, #tpu.memory_space<vmem>>, %arg4: memref<32x1xf32, #tpu.memory_space<vmem>>, %arg5: memref<32x1xf32, #tpu.memory_space<vmem>>, %arg6: memref<2x32x256xf32, #tpu.memory_space<vmem>>) attributes {dimension_semantics = [#tpu.dimension_semantics<parallel>], iteration_bounds = array<i64: 1>, scalar_prefetch = 0 : i64, scratch_operands = 0 : i64, tpu.core_type = #tpu.core_type<tc>, window_params = [{transform_indices = @transform_0, window_bounds = array<i64: 2, 4, 256>}, {pipeline_mode = #tpu.pipeline_mode<synchronous>, transform_indices = @transform_1, window_bounds = array<i64: 32, 36>}, {pipeline_mode = #tpu.pipeline_mode<synchronous>, transform_indices = @transform_2, window_bounds = array<i64: 32, 288>}, {pipeline_mode = #tpu.pipeline_mode<synchronous>, transform_indices = @transform_3, window_bounds = array<i64: 32, 1>}, {pipeline_mode = #tpu.pipeline_mode<synchronous>, transform_indices = @transform_4, window_bounds = array<i64: 32, 1>}, {transform_indices = @transform_5, window_bounds = array<i64: 2, 32, 256>}]} {
    %0 = tpu.iota {dimensions = array<i32: 1>} : vector<1x512xi32>
    %c16_i32 = arith.constant 16 : i32
    %c0_i32 = arith.constant 0 : i32
    %1 = arith.cmpi eq, %c16_i32, %c0_i32 : i32
    %c1_i32 = arith.constant 1 : i32
    %2 = arith.select %1, %c1_i32, %c16_i32 : i32
    %3 = vector.broadcast %2 : i32 to vector<1x512xi32>
    %4 = arith.remsi %0, %3 : vector<1x512xi32>
    %c0_i32_0 = arith.constant 0 : i32
    %5 = vector.broadcast %c0_i32_0 : i32 to vector<1x512xi32>
    %6 = arith.cmpi ne, %4, %5 : vector<1x512xi32>
    %c0_i32_1 = arith.constant 0 : i32
    %7 = vector.broadcast %c0_i32_1 : i32 to vector<1x512xi32>
    %8 = arith.cmpi slt, %4, %7 : vector<1x512xi32>
    %c0_i32_2 = arith.constant 0 : i32
    %9 = arith.cmpi slt, %2, %c0_i32_2 : i32
    %10 = vector.broadcast %9 : i1 to vector<1x512xi1>
    %11 = vector.broadcast %10 : vector<1x512xi1> to vector<1x512xi1>
    %12 = arith.xori %8, %11 : vector<1x512xi1>
    %13 = arith.andi %12, %6 : vector<1x512xi1>
    %14 = vector.broadcast %2 : i32 to vector<1x512xi32>
    %15 = arith.addi %4, %14 : vector<1x512xi32>
    %16 = arith.select %13, %15, %4 : vector<1x512xi1>, vector<1x512xi32>
    %c256_i32 = arith.constant 256 : i32
    %c0_i32_3 = arith.constant 0 : i32
    %17 = arith.cmpi eq, %c256_i32, %c0_i32_3 : i32
    %c1_i32_4 = arith.constant 1 : i32
    %18 = arith.select %17, %c1_i32_4, %c256_i32 : i32
    %19 = vector.broadcast %18 : i32 to vector<1x512xi32>
    %20 = arith.remsi %0, %19 : vector<1x512xi32>
    %c0_i32_5 = arith.constant 0 : i32
    %21 = vector.broadcast %c0_i32_5 : i32 to vector<1x512xi32>
    %22 = arith.cmpi ne, %20, %21 : vector<1x512xi32>
    %c0_i32_6 = arith.constant 0 : i32
    %23 = vector.broadcast %c0_i32_6 : i32 to vector<1x512xi32>
    %24 = arith.cmpi slt, %20, %23 : vector<1x512xi32>
    %c0_i32_7 = arith.constant 0 : i32
    %25 = arith.cmpi slt, %18, %c0_i32_7 : i32
    %26 = vector.broadcast %25 : i1 to vector<1x512xi1>
    %27 = vector.broadcast %26 : vector<1x512xi1> to vector<1x512xi1>
    %28 = arith.xori %24, %27 : vector<1x512xi1>
    %29 = arith.andi %28, %22 : vector<1x512xi1>
    %30 = vector.broadcast %18 : i32 to vector<1x512xi32>
    %31 = arith.addi %20, %30 : vector<1x512xi32>
    %32 = arith.select %29, %31, %20 : vector<1x512xi1>, vector<1x512xi32>
    %c1_i32_8 = arith.constant 1 : i32
    %33 = vector.broadcast %c1_i32_8 : i32 to vector<1x512xi32>
    %34 = arith.cmpi sge, %16, %33 : vector<1x512xi32>
    %c14_i32 = arith.constant 14 : i32
    %35 = vector.broadcast %c14_i32 : i32 to vector<1x512xi32>
    %36 = arith.cmpi sle, %16, %35 : vector<1x512xi32>
    %c16_i32_9 = arith.constant 16 : i32
    %37 = vector.broadcast %c16_i32_9 : i32 to vector<1x512xi32>
    %38 = arith.cmpi sge, %32, %37 : vector<1x512xi32>
    %c240_i32 = arith.constant 240 : i32
    %39 = vector.broadcast %c240_i32 : i32 to vector<1x512xi32>
    %40 = arith.cmpi slt, %32, %39 : vector<1x512xi32>
    %c0 = arith.constant 0 : index
    %c0_10 = arith.constant 0 : index
    %c0_11 = arith.constant 0 : index
    %41 = vector.load %arg1[%c0, %c0_10, %c0_11] : memref<2x4x256xf32, #tpu.memory_space<vmem>>, vector<1x4x256xf32>
    %42 = vector.shape_cast %41 : vector<1x4x256xf32> to vector<4x256xf32>
    %43 = arith.truncf %42 : vector<4x256xf32> to vector<4x256xbf16>
    %c1 = arith.constant 1 : index
    %c0_12 = arith.constant 0 : index
    %c0_13 = arith.constant 0 : index
    %44 = vector.load %arg1[%c1, %c0_12, %c0_13] : memref<2x4x256xf32, #tpu.memory_space<vmem>>, vector<1x4x256xf32>
    %45 = vector.shape_cast %44 : vector<1x4x256xf32> to vector<4x256xf32>
    %46 = arith.truncf %45 : vector<4x256xf32> to vector<4x256xbf16>
    %47 = tpu.concatenate %43, %46 in 1 : vector<4x256xbf16>, vector<4x256xbf16> -> vector<4x512xbf16>
    %cst = arith.constant 0.000000e+00 : bf16
    %48 = vector.broadcast %cst : bf16 to vector<4x17xbf16>
    %49 = vector.extract_strided_slice %47 {offsets = [0, 0], sizes = [4, 495], strides = [1, 1]} : vector<4x512xbf16> to vector<4x495xbf16>
    %50 = tpu.concatenate %48, %49 in 1 : vector<4x17xbf16>, vector<4x495xbf16> -> vector<4x512xbf16>
    %51 = arith.andi %38, %34 : vector<1x512xi1>
    %cst_14 = arith.constant 0.000000e+00 : bf16
    %52 = vector.broadcast %cst_14 : bf16 to vector<4x512xbf16>
    %53 = vector.shape_cast %51 : vector<1x512xi1> to vector<1x512xi1>
    %54 = vector.broadcast %53 : vector<1x512xi1> to vector<4x512xi1>
    %55 = arith.select %54, %50, %52 : vector<4x512xi1>, vector<4x512xbf16>
    %cst_15 = arith.constant 0.000000e+00 : bf16
    %56 = vector.broadcast %cst_15 : bf16 to vector<4x16xbf16>
    %57 = vector.extract_strided_slice %47 {offsets = [0, 0], sizes = [4, 496], strides = [1, 1]} : vector<4x512xbf16> to vector<4x496xbf16>
    %58 = tpu.concatenate %56, %57 in 1 : vector<4x16xbf16>, vector<4x496xbf16> -> vector<4x512xbf16>
    %cst_16 = arith.constant 0.000000e+00 : bf16
    %59 = vector.broadcast %cst_16 : bf16 to vector<4x512xbf16>
    %60 = vector.shape_cast %38 : vector<1x512xi1> to vector<1x512xi1>
    %61 = vector.broadcast %60 : vector<1x512xi1> to vector<4x512xi1>
    %62 = arith.select %61, %58, %59 : vector<4x512xi1>, vector<4x512xbf16>
    %cst_17 = arith.constant 0.000000e+00 : bf16
    %63 = vector.broadcast %cst_17 : bf16 to vector<4x15xbf16>
    %64 = vector.extract_strided_slice %47 {offsets = [0, 0], sizes = [4, 497], strides = [1, 1]} : vector<4x512xbf16> to vector<4x497xbf16>
    %65 = tpu.concatenate %63, %64 in 1 : vector<4x15xbf16>, vector<4x497xbf16> -> vector<4x512xbf16>
    %66 = arith.andi %38, %36 : vector<1x512xi1>
    %cst_18 = arith.constant 0.000000e+00 : bf16
    %67 = vector.broadcast %cst_18 : bf16 to vector<4x512xbf16>
    %68 = vector.shape_cast %66 : vector<1x512xi1> to vector<1x512xi1>
    %69 = vector.broadcast %68 : vector<1x512xi1> to vector<4x512xi1>
    %70 = arith.select %69, %65, %67 : vector<4x512xi1>, vector<4x512xbf16>
    %cst_19 = arith.constant 0.000000e+00 : bf16
    %71 = vector.broadcast %cst_19 : bf16 to vector<4x1xbf16>
    %72 = vector.extract_strided_slice %47 {offsets = [0, 0], sizes = [4, 511], strides = [1, 1]} : vector<4x512xbf16> to vector<4x511xbf16>
    %73 = tpu.concatenate %71, %72 in 1 : vector<4x1xbf16>, vector<4x511xbf16> -> vector<4x512xbf16>
    %cst_20 = arith.constant 0.000000e+00 : bf16
    %74 = vector.broadcast %cst_20 : bf16 to vector<4x512xbf16>
    %75 = vector.shape_cast %34 : vector<1x512xi1> to vector<1x512xi1>
    %76 = vector.broadcast %75 : vector<1x512xi1> to vector<4x512xi1>
    %77 = arith.select %76, %73, %74 : vector<4x512xi1>, vector<4x512xbf16>
    %cst_21 = arith.constant 0.000000e+00 : bf16
    %78 = vector.broadcast %cst_21 : bf16 to vector<4x1xbf16>
    %79 = vector.extract_strided_slice %47 {offsets = [0, 1], sizes = [4, 511], strides = [1, 1]} : vector<4x512xbf16> to vector<4x511xbf16>
    %80 = tpu.concatenate %79, %78 in 1 : vector<4x511xbf16>, vector<4x1xbf16> -> vector<4x512xbf16>
    %cst_22 = arith.constant 0.000000e+00 : bf16
    %81 = vector.broadcast %cst_22 : bf16 to vector<4x512xbf16>
    %82 = vector.shape_cast %36 : vector<1x512xi1> to vector<1x512xi1>
    %83 = vector.broadcast %82 : vector<1x512xi1> to vector<4x512xi1>
    %84 = arith.select %83, %80, %81 : vector<4x512xi1>, vector<4x512xbf16>
    %cst_23 = arith.constant 0.000000e+00 : bf16
    %85 = vector.broadcast %cst_23 : bf16 to vector<4x15xbf16>
    %86 = vector.extract_strided_slice %47 {offsets = [0, 15], sizes = [4, 497], strides = [1, 1]} : vector<4x512xbf16> to vector<4x497xbf16>
    %87 = tpu.concatenate %86, %85 in 1 : vector<4x497xbf16>, vector<4x15xbf16> -> vector<4x512xbf16>
    %88 = arith.andi %40, %34 : vector<1x512xi1>
    %cst_24 = arith.constant 0.000000e+00 : bf16
    %89 = vector.broadcast %cst_24 : bf16 to vector<4x512xbf16>
    %90 = vector.shape_cast %88 : vector<1x512xi1> to vector<1x512xi1>
    %91 = vector.broadcast %90 : vector<1x512xi1> to vector<4x512xi1>
    %92 = arith.select %91, %87, %89 : vector<4x512xi1>, vector<4x512xbf16>
    %cst_25 = arith.constant 0.000000e+00 : bf16
    %93 = vector.broadcast %cst_25 : bf16 to vector<4x16xbf16>
    %94 = vector.extract_strided_slice %47 {offsets = [0, 16], sizes = [4, 496], strides = [1, 1]} : vector<4x512xbf16> to vector<4x496xbf16>
    %95 = tpu.concatenate %94, %93 in 1 : vector<4x496xbf16>, vector<4x16xbf16> -> vector<4x512xbf16>
    %cst_26 = arith.constant 0.000000e+00 : bf16
    %96 = vector.broadcast %cst_26 : bf16 to vector<4x512xbf16>
    %97 = vector.shape_cast %40 : vector<1x512xi1> to vector<1x512xi1>
    %98 = vector.broadcast %97 : vector<1x512xi1> to vector<4x512xi1>
    %99 = arith.select %98, %95, %96 : vector<4x512xi1>, vector<4x512xbf16>
    %cst_27 = arith.constant 0.000000e+00 : bf16
    %100 = vector.broadcast %cst_27 : bf16 to vector<4x17xbf16>
    %101 = vector.extract_strided_slice %47 {offsets = [0, 17], sizes = [4, 495], strides = [1, 1]} : vector<4x512xbf16> to vector<4x495xbf16>
    %102 = tpu.concatenate %101, %100 in 1 : vector<4x495xbf16>, vector<4x17xbf16> -> vector<4x512xbf16>
    %103 = arith.andi %40, %36 : vector<1x512xi1>
    %cst_28 = arith.constant 0.000000e+00 : bf16
    %104 = vector.broadcast %cst_28 : bf16 to vector<4x512xbf16>
    %105 = vector.shape_cast %103 : vector<1x512xi1> to vector<1x512xi1>
    %106 = vector.broadcast %105 : vector<1x512xi1> to vector<4x512xi1>
    %107 = arith.select %106, %102, %104 : vector<4x512xi1>, vector<4x512xbf16>
    %108 = tpu.concatenate %55, %62, %70, %77, %47, %84, %92, %99, %107 in 0 : vector<4x512xbf16>, vector<4x512xbf16>, vector<4x512xbf16>, vector<4x512xbf16>, vector<4x512xbf16>, vector<4x512xbf16>, vector<4x512xbf16>, vector<4x512xbf16>, vector<4x512xbf16> -> vector<36x512xbf16>
    %c0_29 = arith.constant 0 : index
    %c0_30 = arith.constant 0 : index
    %109 = vector.load %arg2[%c0_29, %c0_30] : memref<32x36xbf16, #tpu.memory_space<vmem>>, vector<32x36xbf16>
    %cst_31 = arith.constant dense<0.000000e+00> : vector<32x512xf32>
    %110 = tpu.matmul %109, %108, %cst_31 {dimension_numbers = #tpu.dot_dimension_numbers<[1], [0], [0], [1], [0, 0, 1, 1], [], []>} : vector<32x36xbf16>, vector<36x512xbf16>, vector<32x512xf32> -> vector<32x512xf32>
    %c0_32 = arith.constant 0 : index
    %c0_33 = arith.constant 0 : index
    %111 = vector.load %arg4[%c0_32, %c0_33] : memref<32x1xf32, #tpu.memory_space<vmem>>, vector<32x1xf32>
    %112 = vector.broadcast %111 : vector<32x1xf32> to vector<32x512xf32>
    %113 = arith.addf %110, %112 : vector<32x512xf32>
    %cst_34 = arith.constant 0.000000e+00 : f32
    %114 = vector.broadcast %cst_34 : f32 to vector<32x512xf32>
    %115 = arith.cmpf ogt, %113, %114 : vector<32x512xf32>
    %cst_35 = arith.constant 0.00999999977 : f32
    %116 = vector.broadcast %cst_35 : f32 to vector<32x512xf32>
    %117 = arith.mulf %116, %113 : vector<32x512xf32>
    %118 = arith.select %115, %113, %117 : vector<32x512xi1>, vector<32x512xf32>
    %119 = arith.truncf %118 : vector<32x512xf32> to vector<32x512xbf16>
    %cst_36 = arith.constant 0.000000e+00 : bf16
    %120 = vector.broadcast %cst_36 : bf16 to vector<32x17xbf16>
    %121 = vector.extract_strided_slice %119 {offsets = [0, 0], sizes = [32, 495], strides = [1, 1]} : vector<32x512xbf16> to vector<32x495xbf16>
    %122 = tpu.concatenate %120, %121 in 1 : vector<32x17xbf16>, vector<32x495xbf16> -> vector<32x512xbf16>
    %123 = arith.andi %38, %34 : vector<1x512xi1>
    %cst_37 = arith.constant 0.000000e+00 : bf16
    %124 = vector.broadcast %cst_37 : bf16 to vector<32x512xbf16>
    %125 = vector.shape_cast %123 : vector<1x512xi1> to vector<1x512xi1>
    %126 = vector.broadcast %125 : vector<1x512xi1> to vector<32x512xi1>
    %127 = arith.select %126, %122, %124 : vector<32x512xi1>, vector<32x512xbf16>
    %cst_38 = arith.constant 0.000000e+00 : bf16
    %128 = vector.broadcast %cst_38 : bf16 to vector<32x16xbf16>
    %129 = vector.extract_strided_slice %119 {offsets = [0, 0], sizes = [32, 496], strides = [1, 1]} : vector<32x512xbf16> to vector<32x496xbf16>
    %130 = tpu.concatenate %128, %129 in 1 : vector<32x16xbf16>, vector<32x496xbf16> -> vector<32x512xbf16>
    %cst_39 = arith.constant 0.000000e+00 : bf16
    %131 = vector.broadcast %cst_39 : bf16 to vector<32x512xbf16>
    %132 = vector.shape_cast %38 : vector<1x512xi1> to vector<1x512xi1>
    %133 = vector.broadcast %132 : vector<1x512xi1> to vector<32x512xi1>
    %134 = arith.select %133, %130, %131 : vector<32x512xi1>, vector<32x512xbf16>
    %cst_40 = arith.constant 0.000000e+00 : bf16
    %135 = vector.broadcast %cst_40 : bf16 to vector<32x15xbf16>
    %136 = vector.extract_strided_slice %119 {offsets = [0, 0], sizes = [32, 497], strides = [1, 1]} : vector<32x512xbf16> to vector<32x497xbf16>
    %137 = tpu.concatenate %135, %136 in 1 : vector<32x15xbf16>, vector<32x497xbf16> -> vector<32x512xbf16>
    %138 = arith.andi %38, %36 : vector<1x512xi1>
    %cst_41 = arith.constant 0.000000e+00 : bf16
    %139 = vector.broadcast %cst_41 : bf16 to vector<32x512xbf16>
    %140 = vector.shape_cast %138 : vector<1x512xi1> to vector<1x512xi1>
    %141 = vector.broadcast %140 : vector<1x512xi1> to vector<32x512xi1>
    %142 = arith.select %141, %137, %139 : vector<32x512xi1>, vector<32x512xbf16>
    %cst_42 = arith.constant 0.000000e+00 : bf16
    %143 = vector.broadcast %cst_42 : bf16 to vector<32x1xbf16>
    %144 = vector.extract_strided_slice %119 {offsets = [0, 0], sizes = [32, 511], strides = [1, 1]} : vector<32x512xbf16> to vector<32x511xbf16>
    %145 = tpu.concatenate %143, %144 in 1 : vector<32x1xbf16>, vector<32x511xbf16> -> vector<32x512xbf16>
    %cst_43 = arith.constant 0.000000e+00 : bf16
    %146 = vector.broadcast %cst_43 : bf16 to vector<32x512xbf16>
    %147 = vector.shape_cast %34 : vector<1x512xi1> to vector<1x512xi1>
    %148 = vector.broadcast %147 : vector<1x512xi1> to vector<32x512xi1>
    %149 = arith.select %148, %145, %146 : vector<32x512xi1>, vector<32x512xbf16>
    %cst_44 = arith.constant 0.000000e+00 : bf16
    %150 = vector.broadcast %cst_44 : bf16 to vector<32x1xbf16>
    %151 = vector.extract_strided_slice %119 {offsets = [0, 1], sizes = [32, 511], strides = [1, 1]} : vector<32x512xbf16> to vector<32x511xbf16>
    %152 = tpu.concatenate %151, %150 in 1 : vector<32x511xbf16>, vector<32x1xbf16> -> vector<32x512xbf16>
    %cst_45 = arith.constant 0.000000e+00 : bf16
    %153 = vector.broadcast %cst_45 : bf16 to vector<32x512xbf16>
    %154 = vector.shape_cast %36 : vector<1x512xi1> to vector<1x512xi1>
    %155 = vector.broadcast %154 : vector<1x512xi1> to vector<32x512xi1>
    %156 = arith.select %155, %152, %153 : vector<32x512xi1>, vector<32x512xbf16>
    %cst_46 = arith.constant 0.000000e+00 : bf16
    %157 = vector.broadcast %cst_46 : bf16 to vector<32x15xbf16>
    %158 = vector.extract_strided_slice %119 {offsets = [0, 15], sizes = [32, 497], strides = [1, 1]} : vector<32x512xbf16> to vector<32x497xbf16>
    %159 = tpu.concatenate %158, %157 in 1 : vector<32x497xbf16>, vector<32x15xbf16> -> vector<32x512xbf16>
    %160 = arith.andi %40, %34 : vector<1x512xi1>
    %cst_47 = arith.constant 0.000000e+00 : bf16
    %161 = vector.broadcast %cst_47 : bf16 to vector<32x512xbf16>
    %162 = vector.shape_cast %160 : vector<1x512xi1> to vector<1x512xi1>
    %163 = vector.broadcast %162 : vector<1x512xi1> to vector<32x512xi1>
    %164 = arith.select %163, %159, %161 : vector<32x512xi1>, vector<32x512xbf16>
    %cst_48 = arith.constant 0.000000e+00 : bf16
    %165 = vector.broadcast %cst_48 : bf16 to vector<32x16xbf16>
    %166 = vector.extract_strided_slice %119 {offsets = [0, 16], sizes = [32, 496], strides = [1, 1]} : vector<32x512xbf16> to vector<32x496xbf16>
    %167 = tpu.concatenate %166, %165 in 1 : vector<32x496xbf16>, vector<32x16xbf16> -> vector<32x512xbf16>
    %cst_49 = arith.constant 0.000000e+00 : bf16
    %168 = vector.broadcast %cst_49 : bf16 to vector<32x512xbf16>
    %169 = vector.shape_cast %40 : vector<1x512xi1> to vector<1x512xi1>
    %170 = vector.broadcast %169 : vector<1x512xi1> to vector<32x512xi1>
    %171 = arith.select %170, %167, %168 : vector<32x512xi1>, vector<32x512xbf16>
    %cst_50 = arith.constant 0.000000e+00 : bf16
    %172 = vector.broadcast %cst_50 : bf16 to vector<32x17xbf16>
    %173 = vector.extract_strided_slice %119 {offsets = [0, 17], sizes = [32, 495], strides = [1, 1]} : vector<32x512xbf16> to vector<32x495xbf16>
    %174 = tpu.concatenate %173, %172 in 1 : vector<32x495xbf16>, vector<32x17xbf16> -> vector<32x512xbf16>
    %175 = arith.andi %40, %36 : vector<1x512xi1>
    %cst_51 = arith.constant 0.000000e+00 : bf16
    %176 = vector.broadcast %cst_51 : bf16 to vector<32x512xbf16>
    %177 = vector.shape_cast %175 : vector<1x512xi1> to vector<1x512xi1>
    %178 = vector.broadcast %177 : vector<1x512xi1> to vector<32x512xi1>
    %179 = arith.select %178, %174, %176 : vector<32x512xi1>, vector<32x512xbf16>
    %180 = tpu.concatenate %127, %134, %142, %149, %119, %156, %164, %171, %179 in 0 : vector<32x512xbf16>, vector<32x512xbf16>, vector<32x512xbf16>, vector<32x512xbf16>, vector<32x512xbf16>, vector<32x512xbf16>, vector<32x512xbf16>, vector<32x512xbf16>, vector<32x512xbf16> -> vector<288x512xbf16>
    %c0_52 = arith.constant 0 : index
    %c0_53 = arith.constant 0 : index
    %181 = vector.load %arg3[%c0_52, %c0_53] : memref<32x288xbf16, #tpu.memory_space<vmem>>, vector<32x288xbf16>
    %cst_54 = arith.constant dense<0.000000e+00> : vector<32x512xf32>
    %182 = tpu.matmul %181, %180, %cst_54 {dimension_numbers = #tpu.dot_dimension_numbers<[1], [0], [0], [1], [0, 0, 1, 1], [], []>} : vector<32x288xbf16>, vector<288x512xbf16>, vector<32x512xf32> -> vector<32x512xf32>
    %c0_55 = arith.constant 0 : index
    %c0_56 = arith.constant 0 : index
    %183 = vector.load %arg5[%c0_55, %c0_56] : memref<32x1xf32, #tpu.memory_space<vmem>>, vector<32x1xf32>
    %184 = vector.broadcast %183 : vector<32x1xf32> to vector<32x512xf32>
    %185 = arith.addf %182, %184 : vector<32x512xf32>
    %cst_57 = arith.constant 0.000000e+00 : f32
    %186 = vector.broadcast %cst_57 : f32 to vector<32x512xf32>
    %187 = arith.cmpf ogt, %185, %186 : vector<32x512xf32>
    %cst_58 = arith.constant 0.00999999977 : f32
    %188 = vector.broadcast %cst_58 : f32 to vector<32x512xf32>
    %189 = arith.mulf %188, %185 : vector<32x512xf32>
    %190 = arith.select %187, %185, %189 : vector<32x512xi1>, vector<32x512xf32>
    %191 = vector.extract_strided_slice %190 {offsets = [0, 0], sizes = [32, 256], strides = [1, 1]} : vector<32x512xf32> to vector<32x256xf32>
    %c0_59 = arith.constant 0 : index
    %c0_60 = arith.constant 0 : index
    %c0_61 = arith.constant 0 : index
    %192 = vector.load %arg6[%c0_59, %c0_60, %c0_61] : memref<2x32x256xf32, #tpu.memory_space<vmem>>, vector<1x32x256xf32>
    %193 = vector.shape_cast %192 : vector<1x32x256xf32> to vector<32x256xf32>
    %194 = vector.shape_cast %191 : vector<32x256xf32> to vector<1x32x256xf32>
    tpu.vector_store %arg6[%c0_59, %c0_60, %c0_61], %194 {strides = array<i32>} : memref<2x32x256xf32, #tpu.memory_space<vmem>>, vector<1x32x256xf32>,
    %195 = vector.extract_strided_slice %190 {offsets = [0, 256], sizes = [32, 256], strides = [1, 1]} : vector<32x512xf32> to vector<32x256xf32>
    %c1_62 = arith.constant 1 : index
    %c0_63 = arith.constant 0 : index
    %c0_64 = arith.constant 0 : index
    %196 = vector.load %arg6[%c1_62, %c0_63, %c0_64] : memref<2x32x256xf32, #tpu.memory_space<vmem>>, vector<1x32x256xf32>
    %197 = vector.shape_cast %196 : vector<1x32x256xf32> to vector<32x256xf32>
    %198 = vector.shape_cast %195 : vector<32x256xf32> to vector<1x32x256xf32>
    tpu.vector_store %arg6[%c1_62, %c0_63, %c0_64], %198 {strides = array<i32>} : memref<2x32x256xf32, #tpu.memory_space<vmem>>, vector<1x32x256xf32>,
    return
  }
  func.func @transform_0(%arg0: i32) -> (i32, i32, i32) {
    %c0_i32 = arith.constant 0 : i32
    %c0_i32_0 = arith.constant 0 : i32
    %c0_i32_1 = arith.constant 0 : i32
    return %arg0, %c0_i32, %c0_i32_0 : i32, i32, i32
  }
  func.func @transform_1(%arg0: i32) -> (i32, i32) {
    %c0_i32 = arith.constant 0 : i32
    %c0_i32_0 = arith.constant 0 : i32
    %c0_i32_1 = arith.constant 0 : i32
    return %c0_i32, %c0_i32_0 : i32, i32
  }
  func.func @transform_2(%arg0: i32) -> (i32, i32) {
    %c0_i32 = arith.constant 0 : i32
    %c0_i32_0 = arith.constant 0 : i32
    %c0_i32_1 = arith.constant 0 : i32
    return %c0_i32, %c0_i32_0 : i32, i32
  }
  func.func @transform_3(%arg0: i32) -> (i32, i32) {
    %c0_i32 = arith.constant 0 : i32
    %c0_i32_0 = arith.constant 0 : i32
    %c0_i32_1 = arith.constant 0 : i32
    return %c0_i32, %c0_i32_0 : i32, i32
  }
  func.func @transform_4(%arg0: i32) -> (i32, i32) {
    %c0_i32 = arith.constant 0 : i32
    %c0_i32_0 = arith.constant 0 : i32
    %c0_i32_1 = arith.constant 0 : i32
    return %c0_i32, %c0_i32_0 : i32, i32
  }
  func.func @transform_5(%arg0: i32) -> (i32, i32, i32) {
    %c0_i32 = arith.constant 0 : i32
    %c0_i32_0 = arith.constant 0 : i32
    %c0_i32_1 = arith.constant 0 : i32
    return %arg0, %c0_i32, %c0_i32_0 : i32, i32, i32
  }
}

</mosaic_0001>

<bundles_post_ra>
// kernel: global_gate_forward.1
= control target key start
LH: loop header
LB: loop body
LE: loop exit
PB: predicated region body
PF: predicated region fallthrough
CT: control target
= control target key end

     0   :  { %v2937_v2 = vmov 0   ;;  %s1758_s22 = smov 16   ;;  %s1760_s23 = smov 17   ;;  %v23_v13 = vlaneseq  ;;  %v2955_v22 = vmov 0  ;;  %v2961_v26 = vmov 0  ;;  %s2869_s0 = inlined_call_operand.vmem [shape: f32[2,4,256], index: 0, kind: input, shape index: {}]   ;;  %s2870_s1 = inlined_call_operand.vmem [shape: bf16[32,36], index: 1, kind: input, shape index: {}]   ;;  %s2871_s3 = inlined_call_operand.vmem [shape: f32[32,1], index: 3, kind: input, shape index: {}]   ;;  %s2872_s2 = inlined_call_operand.vmem [shape: bf16[32,288], index: 2, kind: input, shape index: {}]   ;;  %s2873_s4 = inlined_call_operand.vmem [shape: f32[32,1], index: 4, kind: input, shape index: {}]   ;;  %s2874_s5 = inlined_call_operand.vmem [shape: f32[2,32,256], index: 5, kind: output, shape index: {}]  }
   0x1   :  { %v1642_v0 = vld [vmem:[%s2869_s0 + $0x8] sm:$0xff]  ;;  %v140_v1 = vld [vmem:[%s2869_s0] sm:$0xff]  ;;  %818 = vmatprep.mubr.bf16.mxu0 %v2937_v2  ;;  %871 = vmatprep.mubr.bf16.mxu1 %v2937_v2  ;;  %s1759_s0 = smov 15   ;;  %s1761_s24 = smov 1   ;;  %v735_v11 = vld [vmem:[%s2871_s3 + $0x10] sm:$0xff]  ;;  %vm2875_vm5 = vmmov 1  }
   0x2   :  { %v1805_v3 = vpack.c.bf16 %v1642_v0, %v1642_v0  ;;  %v1807_v4 = vpack.c.bf16 %v140_v1, %v140_v1  ;;  %v149_v5 = vcombine.high %v1642_v0, %v1642_v0  ;;  %v142_v6 = vcombine.high %v140_v1, %v140_v1  ;;  %1744 = vset.pattern.permute.xlu1 %v2937_v2  ;;  %s1762_s25 = smov 127   ;;  %s1763_s26 = smov 113   ;;  %v734_v9 = vld [vmem:[%s2871_s3 + $0x8] sm:$0xff]  ;;  %v733_v10 = vld [vmem:[%s2871_s3] sm:$0xff]  ;;  %v736_v12 = vld [vmem:[%s2871_s3 + $0x18] sm:$0xff] }
   0x3   :  { %1743 = vset.pattern.permute.xlu0 %v2937_v2  ;;  %s1764_s27 = smov 112   ;;  %s1765_s28 = smov 111   ;;  %v24_v14 = vand.u32 127, %v23_v13  ;;  %v2965_v29 = vmov 0  ;;  %v2969_v31 = vmov 0  ;;  %v194_v33 = vshrl.u32 %v23_v13, 7 }
   0x4   :  { %221 = vrot.lane.b32.xlu1 %v1805_v3, %s1758_s22  ;;  %217 = vrot.lane.b32.xlu0 %v1807_v4, %s1758_s22  ;;  %v1815_v7 = vpack.c.bf16 %v149_v5, %v149_v5  ;;  %v1817_v8 = vpack.c.bf16 %v142_v6, %v142_v6  ;;  %v2973_v36 = vmov 0  ;;  %v2975_v37 = vmov 0 }
   0x5   :  { %v26_v15 = vadd.s32 256, %v24_v14  ;;  %v1891_v16 = vadd.s32 128, %v24_v14  ;;  %v32_v17 = vand.u32 15, %v24_v14  ;;  %v80_v18 = vand.u32 255, %v24_v14 }
   0x6   :  { %v1894_v21 = vadd.s32 384, %v24_v14  ;;  %v2977_v38 = vmov 0  ;;  %v2979_v39 = vmov 0  ;;  %v1975_v40 = vsub.s32 0, %v194_v33 }
   0x7   :  { %v94_v19 = vand.u32 255, %v26_v15  ;;  %v39_v20 = vand.u32 15, %v1891_v16  ;;  %vm1896_vm0 = vcmp.le.s32.totalorder %v32_v17, 14  ;;  %v46_v23 = vand.u32 15, %v26_v15 }
   0x8   :  { %223 = vrot.lane.b32.xlu1 %v1815_v7, %s1758_s22  ;;  %219 = vrot.lane.b32.xlu0 %v1817_v8, %s1758_s22  ;;  %v2956_v22 = vsel %vm1896_vm0, 4294967295, %v2955_v22  ;;  %vm1900_vm1 = vcmp.ge.s32.totalorder %v80_v18, 16  ;;  %v53_v27 = vand.u32 15, %v1894_v21  ;;  %vm1935_vm9 = vcmp.ge.s32.totalorder %v32_v17, 1 }
   0x9   :  { %vm1904_vm2 = vcmp.ge.s32.totalorder %v94_v19, 16  ;;  %vm1908_vm3 = vcmp.le.s32.totalorder %v39_v20, 14  ;;  %vm291_vm4 = vmand %vm1900_vm1, %vm1896_vm0  ;;  %vm1924_vm7 = vcmp.le.s32.totalorder %v46_v23, 14  ;;  %v2970_v31 = vsel %vm1935_vm9, 4294967295, %v2969_v31 }
   0xa   :  { %v2962_v26 = vsel %vm1908_vm3, 4294967295, %v2961_v26  ;;  %vm1920_vm6 = vmpackc.low %vm2875_vm5, %vm1900_vm1  ;;  %v2966_v29 = vsel %vm1924_vm7, 4294967295, %v2965_v29  ;;  %vm1947_vm11 = vcmp.ge.s32.totalorder %v46_v23, 1  ;;  %vm1951_vm12 = vcmp.le.s32.totalorder %v53_v27, 14 }
   0xb   :  { %vm1931_vm8 = vmpackc.low %vm2875_vm5, %vm1904_vm2  ;;  %v2974_v36 = vsel %vm1947_vm11, 4294967295, %v2973_v36  ;;  %v2976_v37 = vsel %vm1951_vm12, 4294967295, %v2975_v37  ;;  %vm1959_vm14 = vcmp.ge.s32.totalorder %v39_v20, 1  ;;  %v1979_v43 = vsub.s32 4, %v194_v33 }
   0xc   :  { %274 = vrot.lane.b32.xlu1 %v1817_v8, %s1759_s0  ;;  %272 = vrot.lane.b32.xlu0 %v1807_v4, %s1759_s0  ;;  %vm1943_vm10 = vmpackc.low %vm1908_vm3, %vm291_vm4  ;;  %v2978_v38 = vsel %vm1959_vm14, 4294967295, %v2977_v38  ;;  %vm1967_vm4 = vcmp.ge.s32.totalorder %v53_v27, 1  ;;  %v246_v44 = vsel %vm1920_vm6, 65537, %v2937_v2  ;;  %v247_v45 = vsel %vm1931_vm8, 65537, %v2937_v2 }
   0xd   :  { %vm293_vm13 = vmand %vm1904_vm2, %vm1924_vm7  ;;  %v2980_v39 = vsel %vm1967_vm4, 4294967295, %v2979_v39  ;;  %v305_v46 = vsel %vm1943_vm10, 65537, %v2937_v2  ;;  %v251_v47 = vrot.slane %v246_v44, %v1975_v40  ;;  %v263_v52 = vrot.slane %v247_v45, %v1979_v43 }
   0xe   :  { %vm177_vm15 = vmand %vm1900_vm1, %vm1935_vm9  ;;  %v255_v53 = vrot.slane %v246_v44, %v1979_v43  ;;  %v259_v54 = vrot.slane %v247_v45, %v1975_v40  ;;  %v310_v56 = vrot.slane %v305_v46, %v1975_v40  ;;  %v314_v57 = vrot.slane %v305_v46, %v1979_v43 }
   0xf   :  { %vm179_vm5 = vmand %vm1904_vm2, %vm1947_vm11  ;;  %vm2021_vm10 = vcmp.ne.s16.totalorder %v251_v47, 0  ;;  %v2989_v13 = vmov 0  ;;  %v2991_v14 = vmov 0  ;;  %v2993_v18 = vmov 0 }
  0x10   :  { %278 = vrot.lane.b32.xlu1 %v1815_v7, %s1759_s0  ;;  %276 = vrot.lane.b32.xlu0 %v1805_v3, %s1759_s0  ;;  %vm304_vm7 = vmpackc.low %vm1951_vm12, %vm293_vm13  ;;  %v2995_v19 = vmov 0  ;;  %v2999_v27 = vmov 0  ;;  %v3001_v28 = vmov 0  ;;  %v3003_v35 = vmov 0 }
  0x11   :  { %vm189_vm1 = vmpackc.low %vm1959_vm14, %vm177_vm15  ;;  %v306_v50 = vsel %vm304_vm7, 65537, %v2937_v2  ;;  %vm2025_vm15 = vcmp.ne.s16.totalorder %v263_v52, 0  ;;  %vm2037_vm7 = vcmp.ne.s16.totalorder %v310_v56, 0  ;;  %v3005_v44 = vmov 0 }
  0x12   :  { %vm190_vm2 = vmpackc.low %vm1967_vm4, %vm179_vm5  ;;  %v191_v51 = vsel %vm189_vm1, 65537, %v2937_v2  ;;  %v318_v58 = vrot.slane %v306_v50, %v1975_v40  ;;  %v322_v63 = vrot.slane %v306_v50, %v1979_v43  ;;  %vm2029_vm1 = vcmp.ne.s16.totalorder %v255_v53, 0 }
  0x13   :  { %vm358_vm6 = vmpackc.low %vm1959_vm14, %vm1935_vm9  ;;  %v192_v55 = vsel %vm190_vm2, 65537, %v2937_v2  ;;  %v196_v59 = vrot.slane %v191_v51, %v1975_v40  ;;  %v200_v60 = vrot.slane %v191_v51, %v1979_v43  ;;  %vm2033_vm2 = vcmp.ne.s16.totalorder %v259_v54, 0 }
  0x14   :  { %159 = vrot.lane.b32.xlu1 %v1817_v8, %s1760_s23  ;;  %157 = vrot.lane.b32.xlu0 %v1807_v4, %s1760_s23  ;;  %vm359_vm5 = vmpackc.low %vm1967_vm4, %vm1947_vm11  ;;  %v360_v61 = vsel %vm358_vm6, 65537, %v2937_v2  ;;  %v204_v1 = vrot.slane %v192_v55, %v1975_v40  ;;  %v208_v5 = vrot.slane %v192_v55, %v1979_v43  ;;  %v2990_v13 = vsel %vm2037_vm7, 4294967295, %v2989_v13 }
  0x15   :  { %v361_v6 = vsel %vm359_vm5, 65537, %v2937_v2  ;;  %vm2041_vm5 = vcmp.ne.s16.totalorder %v314_v57, 0  ;;  %v365_v15 = vrot.slane %v360_v61, %v1975_v40  ;;  %v369_v17 = vrot.slane %v360_v61, %v1979_v43 }
  0x16   :  { %v2992_v14 = vsel %vm2041_vm5, 4294967295, %v2991_v14  ;;  %vm2047_vm13 = vcmp.ne.s16.totalorder %v196_v59, 0  ;;  %vm2051_vm11 = vcmp.ne.s16.totalorder %v200_v60, 0  ;;  %v373_v20 = vrot.slane %v361_v6, %v1975_v40 }
  0x17   :  { %v2994_v18 = vsel %vm2047_vm13, 4294967295, %v2993_v18  ;;  %v2996_v19 = vsel %vm2051_vm11, 4294967295, %v2995_v19  ;;  %v377_v23 = vrot.slane %v361_v6, %v1979_v43  ;;  %vm2997_vm6 = vcmask 130048  }
  0x18   :  { %163 = vrot.lane.b32.xlu1 %v1815_v7, %s1760_s23  ;;  %161 = vrot.lane.b32.xlu0 %v1805_v3, %s1760_s23  ;;  %vm2998_vm9 = vmmov %vm2997_vm6  ;;  %vm2059_vm8 = vcmp.ne.s16.totalorder %v318_v58, 0  ;;  %vm2063_vm12 = vcmp.ne.s16.totalorder %v322_v63, 0  ;;  %vm2067_vm4 = vcmp.ne.s16.totalorder %v204_v1, 0  ;;  %vm2071_vm14 = vcmp.ne.s16.totalorder %v208_v5, 0 }
  0x19   :  { %v3000_v27 = vsel %vm2059_vm8, 4294967295, %v2999_v27  ;;  %v3002_v28 = vsel %vm2063_vm12, 4294967295, %v3001_v28  ;;  %v3004_v35 = vsel %vm2067_vm4, 4294967295, %v3003_v35  ;;  %v3006_v44 = vsel %vm2071_vm14, 4294967295, %v3005_v44 }
  0x1a   :  { %v87_v46 = vand.u32 255, %v1891_v16  ;;  %v101_v47 = vand.u32 255, %v1894_v21  ;;  %vm3008_vm0 = vcmask 138240   ;;  %vm2083_vm8 = vcmp.ne.s16.totalorder %v365_v15, 0 }
  0x1b   :  { %vm3009_vm12 = vmmov %vm3008_vm0  ;;  %v3010_v52 = vmov 0  ;;  %vm2087_vm14 = vcmp.ne.s16.totalorder %v369_v17, 0  ;;  %v3012_v53 = vmov 0  ;;  %v3014_v21 = vmov 0 }
  0x1c   :  { %333 = vrot.lane.b32.xlu1 %v1817_v8, %s1761_s24  ;;  %331 = vrot.lane.b32.xlu0 %v1807_v4, %s1761_s24  ;;  %v3011_v52 = vsel %vm2083_vm8, 4294967295, %v3010_v52  ;;  %v3013_v53 = vsel %vm2087_vm14, 4294967295, %v3012_v53  ;;  %vm2114_vm3 = vcmp.lt.s32.totalorder %v87_v46, 240  ;;  %v3078_v61 = vmov 0 }
  0x20   :  { %337 = vrot.lane.b32.xlu1 %v1815_v7, %s1761_s24  ;;  %335 = vrot.lane.b32.xlu0 %v1805_v3, %s1761_s24 }
  0x24   :  { %390 = vrot.lane.b32.xlu1 %v1805_v3, %s1762_s25  ;;  %388 = vrot.lane.b32.xlu0 %v1817_v8, %s1762_s25 }
  0x28   :  { %386 = vrot.lane.b32.xlu1 %v1807_v4, %s1762_s25  ;;  %392 = vrot.lane.b32.xlu0 %v1815_v7, %s1762_s25 }
  0x2c   :  { %445 = vrot.lane.b32.xlu1 %v1805_v3, %s1763_s26  ;;  %443 = vrot.lane.b32.xlu0 %v1817_v8, %s1763_s26 }
  0x30   :  { %441 = vrot.lane.b32.xlu1 %v1807_v4, %s1763_s26  ;;  %447 = vrot.lane.b32.xlu0 %v1815_v7, %s1763_s26 }
  0x34   :  { %504 = vrot.lane.b32.xlu1 %v1805_v3, %s1764_s27  ;;  %502 = vrot.lane.b32.xlu0 %v1817_v8, %s1764_s27 }
  0x38   :  { %500 = vrot.lane.b32.xlu1 %v1807_v4, %s1764_s27  ;;  %506 = vrot.lane.b32.xlu0 %v1815_v7, %s1764_s27 }
  0x3c   :  { %557 = vrot.lane.b32.xlu1 %v1817_v8, %s1765_s28  ;;  %555 = vrot.lane.b32.xlu0 %v1807_v4, %s1765_s28 }
  0x40   :  { %561 = vrot.lane.b32.xlu1 %v1815_v7, %s1765_s28  ;;  %559 = vrot.lane.b32.xlu0 %v1805_v3, %s1765_s28 }
  0x44   :  { %744 = vperm.xlu1 %1744, %v734_v9   ;;  %739 = vperm.xlu0 %1743, %v733_v10   ;;  %v2981_v9 = vmov 0  ;;  %v2983_v10 = vmov 0 }
  0x45   :  { %v2982_v9 = vsel %vm2021_vm10, 4294967295, %v2981_v9  ;;  %v2984_v10 = vsel %vm2025_vm15, 4294967295, %v2983_v10 }
  0x48   :  { %749 = vperm.xlu1 %1744, %v735_v11   ;;  %754 = vperm.xlu0 %1743, %v736_v12   ;;  %v2985_v11 = vmov 0  ;;  %v2987_v12 = vmov 0 }
  0x49   :  { %v2986_v11 = vsel %vm2029_vm1, 4294967295, %v2985_v11  ;;  %v2988_v12 = vsel %vm2033_vm2, 4294967295, %v2987_v12 }
  0x76   :  { %v1939_v32 = vpop.permute.xlu1 %221  ;;  %v218_v34 = vpop.permute.xlu0 %217 }
  0x77   :  { %v234_v24 = vsel %vm2997_vm6, 0, %v218_v34 }
  0x7a   :  { %v224_v41 = vpop.permute.xlu1 %223  ;;  %v220_v42 = vpop.permute.xlu0 %219 }
  0x7b   :  { %v226_v25 = vsel %vm2998_vm9, %v218_v34, %v220_v42  ;;  %vm3007_vm9 = vmmov %vm2997_vm6  ;;  %v227_v45 = vsel %vm2997_vm6, %v220_v42, %v1939_v32  ;;  %vm2095_vm6 = vcmp.ne.s16.totalorder %v373_v20, 0 }
  0x7c   :  { %v228_v34 = vsel %vm3007_vm9, %v1939_v32, %v224_v41  ;;  %v268_v32 = vsel %vm2021_vm10, %v234_v24, 0  ;;  %v269_v16 = vsel %vm2029_vm1, %v226_v25, 0  ;;  %v3015_v21 = vsel %vm2095_vm6, 4294967295, %v3014_v21 }
  0x7d   :  { %v3016_v41 = vmov 0  ;;  %v271_v42 = vsel %vm2025_vm15, %v228_v34, 0  ;;  %v270_v54 = vsel %vm2033_vm2, %v227_v45, 0  ;;  %vm2118_vm15 = vcmp.lt.s32.totalorder %v101_v47, 240 }
  0x7e   :  { %v1995_v48 = vpop.permute.xlu1 %274  ;;  %v273_v49 = vpop.permute.xlu0 %272  ;;  %v618_v1 = vrot.slane %v268_v32, 6  ;;  %v619_v5 = vrot.slane %v269_v16, 6  ;;  %v621_v15 = vrot.slane %v271_v42, 6  ;;  %v620_v17 = vrot.slane %v270_v54, 6 }
  0x7f   :  { %vm3026_vm2 = vcmask 121856   ;;  %vm3028_vm1 = vcmask 1041408  }
  0x80   :  { %vm3027_vm10 = vmmov %vm3026_vm2 }
  0x82   :  { %v279_v62 = vpop.permute.xlu1 %278  ;;  %v277_v0 = vpop.permute.xlu0 %276 }
  0x83   :  { %v282_v24 = vsel %vm3026_vm2, %v1995_v48, %v277_v0  ;;  %v283_v25 = vsel %vm3027_vm10, %v277_v0, %v279_v62  ;;  %vm3033_vm10 = vnez %v3000_v27  ;;  %vm3036_vm2 = vnez %v2962_v26 }
  0x84   :  { %v329_v16 = vsel %vm3033_vm10, %v282_v24, 0  ;;  %vm3041_vm10 = vnez %v2978_v38  ;;  %v3076_v26 = vmov 0 }
  0x86   :  { %v160_v30 = vpop.permute.xlu1 %159  ;;  %v158_v33 = vpop.permute.xlu0 %157 }
  0x87   :  { %v166_v50 = vsel %vm3008_vm0, %v158_v33, %v160_v30  ;;  %v175_v51 = vsel %vm3009_vm12, 0, %v158_v33  ;;  %vm2099_vm0 = vcmp.ne.s16.totalorder %v377_v23, 0  ;;  %vm3018_vm12 = vcmask 121856  }
  0x88   :  { %v3017_v41 = vsel %vm2099_vm0, 4294967295, %v3016_v41  ;;  %v281_v55 = vsel %vm3018_vm12, %v273_v49, %v1995_v48  ;;  %vm3019_vm9 = vmmov %vm3018_vm12  ;;  %v213_v59 = vsel %vm2047_vm13, %v175_v51, 0  ;;  %v214_v60 = vsel %vm2051_vm11, %v166_v50, 0 }
  0x89   :  { %v289_v56 = vsel %vm3019_vm9, 0, %v273_v49  ;;  %vm3024_vm12 = vcmask 138240   ;;  %v328_v23 = vsel %vm2041_vm5, %v281_v55, 0  ;;  %v668_v45 = vsel %vm3028_vm1, %v214_v60, %v619_v5 }
  0x8a   :  { %v164_v57 = vpop.permute.xlu1 %163  ;;  %v162_v58 = vpop.permute.xlu0 %161  ;;  %vm3025_vm9 = vmmov %vm3024_vm12  ;;  %v327_v20 = vsel %vm2037_vm7, %v289_v56, 0  ;;  %vm3031_vm7 = vcmask 7168   ;;  %v627_v48 = vrot.slane %v328_v23, 4 }
  0x8b   :  { %v167_v49 = vsel %vm3024_vm12, %v160_v30, %v162_v58  ;;  %v168_v6 = vsel %vm3025_vm9, %v162_v58, %v164_v57  ;;  %vm3029_vm12 = vmmov %vm3028_vm1  ;;  %vm3030_vm9 = vnez %v3006_v44  ;;  %v626_v32 = vrot.slane %v327_v20, 4 }
  0x8c   :  { %v665_v30 = vsel %vm3029_vm12, %v213_v59, %v618_v1  ;;  %v215_v46 = vsel %vm2067_vm4, %v167_v49, 0  ;;  %v216_v47 = vsel %vm3030_vm9, %v168_v6, 0  ;;  %vm3032_vm5 = vmmov %vm3031_vm7  ;;  %vm3034_vm1 = vnez %v3002_v28 }
  0x8d   :  { %v330_v42 = vsel %vm3034_vm1, %v283_v25, 0  ;;  %vm3037_vm12 = vcmask 1043456   ;;  %vm461_vm1 = vmand %vm2114_vm3, %vm3041_vm10 }
  0x8e   :  { %v334_v33 = vpop.permute.xlu1 %333  ;;  %v332_v34 = vpop.permute.xlu0 %331  ;;  %v679_v58 = vsel %vm3037_vm12, %v668_v45, %v627_v48  ;;  %vm3042_vm4 = vmmov %vm3032_vm5 }
  0x8f   :  { %v340_v50 = vsel %vm3031_vm7, %v332_v34, %v334_v33  ;;  %v348_v51 = vsel %vm3032_vm5, 0, %v332_v34  ;;  %vm3035_vm7 = vnez %v2956_v22  ;;  %vm3043_vm11 = vmmov %vm3042_vm4  ;;  %vm3044_vm5 = vcmask 1045504  }
  0x90   :  { %v382_v62 = vsel %vm2083_vm8, %v348_v51, 0  ;;  %v383_v0 = vsel %vm2087_vm14, %v340_v50, 0  ;;  %vm3038_vm8 = vmmov %vm3037_vm12  ;;  %vm3039_vm14 = vcmask 1041408   ;;  %vm3046_vm12 = vnez %v2980_v39 }
  0x91   :  { %v634_v54 = vrot.slane %v382_v62, 2  ;;  %v635_v55 = vrot.slane %v383_v0, 2  ;;  %v677_v59 = vsel %vm3038_vm8, %v665_v30, %v626_v32  ;;  %v674_v60 = vsel %vm3039_vm14, %v216_v47, %v621_v15  ;;  %vm3040_vm9 = vmmov %vm3039_vm14 }
  0x92   :  { %v338_v56 = vpop.permute.xlu1 %337  ;;  %v336_v57 = vpop.permute.xlu0 %335  ;;  %v671_v1 = vsel %vm3040_vm9, %v215_v46, %v620_v17  ;;  %vm3045_vm13 = vmmov %vm3044_vm5  ;;  %v628_v15 = vrot.slane %v329_v16, 4  ;;  %v629_v17 = vrot.slane %v330_v42, 4  ;;  %vm3051_vm14 = vcmask 1043456  }
  0x93   :  { %v341_v5 = vsel %vm3042_vm4, %v334_v33, %v336_v57  ;;  %v342_v49 = vsel %vm3043_vm11, %v336_v57, %v338_v56  ;;  %v689_v6 = vsel %vm3044_vm5, %v679_v58, %v635_v55  ;;  %v686_v20 = vsel %vm3045_vm13, %v677_v59, %v634_v54  ;;  %vm3050_vm5 = vmpackc.low %vm3036_vm2, %vm3035_vm7 }
  0x94   :  { %v384_v23 = vsel %vm2095_vm6, %v341_v5, 0  ;;  %v385_v24 = vsel %vm2099_vm0, %v342_v49, 0  ;;  %786 = vmatprep.subr.bf16.mxu0 %v689_v6  ;;  %vm3047_vm11 = vnez %v2966_v29  ;;  %vm3048_vm4 = vnez %v2976_v37  ;;  %vm3052_vm6 = vmmov %vm3051_vm14 }
  0x95   :  { %vm414_vm8 = vmpackc.low %vm3048_vm4, %vm3047_vm11  ;;  %v636_v25 = vrot.slane %v384_v23, 2  ;;  %v637_v33 = vrot.slane %v385_v24, 2  ;;  %787 = vmatpush1.bf16.msra.mxu0 %v686_v20  ;;  %vm3049_vm13 = vnez %v2970_v31  ;;  %v415_v45 = vsel %vm3050_vm5, 65537, %v2937_v2 }
  0x96   :  { %vm472_vm9 = vmpackc.low %vm461_vm1, %vm3049_vm13  ;;  %v391_v34 = vpop.permute.xlu1 %390  ;;  %v389_v30 = vpop.permute.xlu0 %388  ;;  %v683_v46 = vsel %vm3051_vm14, %v674_v60, %v629_v17  ;;  %v681_v47 = vsel %vm3052_vm6, %v671_v1, %v628_v15  ;;  %vm3053_vm0 = vnez %v2974_v36  ;;  %vm3055_vm13 = vcmask 1045504  }
  0x97   :  { %vm3054_vm10 = vmand %vm2118_vm15, %vm3046_vm12  ;;  %v695_v31 = vsel %vm3055_vm13, %v683_v46, %v637_v33  ;;  %v416_v50 = vsel %vm414_vm8, 65537, %v2937_v2  ;;  %vm3057_vm5 = vmmov 1   ;;  %v474_v51 = vsel %vm472_vm9, 65537, %v2937_v2 }
  0x98   :  { %vm473_vm1 = vmpackc.low %vm3054_vm10, %vm3053_vm0  ;;  %839 = vmatprep.subr.bf16.mxu1 %v695_v31  ;;  %v424_v36 = vrot.slane %v415_v45, %v1979_v43  ;;  %v420_v32 = vrot.slane %v415_v45, %v1975_v40  ;;  %v428_v62 = vrot.slane %v416_v50, %v1975_v40  ;;  %v432_v0 = vrot.slane %v416_v50, %v1979_v43 }
  0x99   :  { %vm3056_vm11 = vmmov %vm3055_vm13  ;;  %v475_v39 = vsel %vm473_vm1, 65537, %v2937_v2  ;;  %v483_v54 = vrot.slane %v474_v51, %v1979_v43  ;;  %vm2920_vm0 = vcmask 1039360   ;;  %v479_v55 = vrot.slane %v474_v51, %v1975_v40 }
  0x9a   :  { %v692_v38 = vsel %vm3056_vm11, %v681_v47, %v636_v25  ;;  %vm527_vm14 = vmpackc.low %vm2114_vm3, %vm3057_vm5  ;;  %v387_v48 = vpop.permute.xlu1 %386  ;;  %v393_v16 = vpop.permute.xlu0 %392  ;;  %v487_v56 = vrot.slane %v475_v39, %v1975_v40  ;;  %vm2921_vm11 = vcmask 924672   ;;  %v491_v58 = vrot.slane %v475_v39, %v1979_v43 }
  0x9b   :  { %840 = vmatpush1.bf16.msra.mxu1 %v692_v38  ;;  %vm528_vm6 = vmpackc.low %vm2118_vm15, %vm3057_vm5  ;;  %v529_v42 = vsel %vm527_vm14, 65537, %v2937_v2  ;;  %vm2228_vm9 = vcmp.ne.s16.totalorder %v424_v36, 0  ;;  %vm2232_vm10 = vcmp.ne.s16.totalorder %v420_v32, 0  ;;  %v3060_v5 = vmov 0 }
  0x9c   :  { %v530_v57 = vsel %vm528_vm6, 65537, %v2937_v2  ;;  %vm575_vm12 = vmand %vm2114_vm3, %vm3036_vm2  ;;  %v538_v59 = vrot.slane %v529_v42, %v1979_v43  ;;  %v534_v60 = vrot.slane %v529_v42, %v1975_v40  ;;  %v3061_v5 = vsel %vm2232_vm10, 4294967295, %v3060_v5 }
  0x9d   :  { %vm2236_vm1 = vcmp.ne.s16.totalorder %v428_v62, 0  ;;  %vm2240_vm13 = vcmp.ne.s16.totalorder %v432_v0, 0  ;;  %v396_v17 = vsel %vm2920_vm0, %v389_v30, %v391_v34  ;;  %v395_v23 = vsel %vm2920_vm0, %v387_v48, %v389_v30  ;;  %vm586_vm14 = vmpackc.low %vm575_vm12, %vm3035_vm7 }
  0x9e   :  { %v446_v20 = vpop.permute.xlu1 %445  ;;  %v444_v15 = vpop.permute.xlu0 %443  ;;  %vm2246_vm5 = vcmp.ne.s16.totalorder %v483_v54, 0  ;;  %v542_v25 = vrot.slane %v530_v57, %v1975_v40  ;;  %vm2259_vm6 = vcmp.ne.s16.totalorder %v479_v55, 0  ;;  %vm2263_vm0 = vcmp.ne.s16.totalorder %v487_v56, 0  ;;  %vm3073_vm3 = vmand %vm2118_vm15, %vm3048_vm4 }
  0x9f   :  { %v451_v33 = vsel %vm2921_vm11, %v444_v15, %v446_v20  ;;  %v3070_v30 = vmov 0  ;;  %v546_v46 = vrot.slane %v530_v57, %v1979_v43  ;;  %vm3072_vm8 = vnez %v2966_v29 }
  0xa0   :  { %v3071_v30 = vsel %vm2263_vm0, 4294967295, %v3070_v30  ;;  %vm587_vm7 = vmpackc.low %vm3073_vm3, %vm3072_vm8  ;;  %vm2275_vm2 = vcmp.ne.s16.totalorder %v491_v58, 0  ;;  %vm2279_vm11 = vcmp.ne.s16.totalorder %v538_v59, 0  ;;  %vm2283_vm0 = vcmp.ne.s16.totalorder %v534_v60, 0 }
  0xa1   :  { %v3077_v26 = vsel %vm2279_vm11, 4294967295, %v3076_v26  ;;  %v3079_v61 = vsel %vm2283_vm0, 4294967295, %v3078_v61  ;;  %v438_v29 = vsel %vm2228_vm9, %v396_v17, 0  ;;  %v437_v37 = vsel %vm2232_vm10, %v395_v23, 0 }
  0xa2   :  { %vm3080_vm15 = vcmask 1039360   ;;  %v442_v47 = vpop.permute.xlu1 %441  ;;  %v448_v31 = vpop.permute.xlu0 %447  ;;  %v2293_v38 = vsel %vm586_vm14, 65537, %v2937_v2  ;;  %v497_v51 = vsel %vm2246_vm5, %v451_v33, 0  ;;  %vm2298_vm8 = vcmp.ne.s16.totalorder %v542_v25, 0 }
  0xa3   :  { %v403_v63 = vsel %vm3080_vm15, %v393_v16, 0  ;;  %vm3081_vm4 = vmmov %vm3080_vm15  ;;  %v3082_v36 = vmov 0  ;;  %v589_v39 = vsel %vm587_vm7, 65537, %v2937_v2  ;;  %vm3085_vm3 = vcmask 924672  }
  0xa4   :  { %v397_v50 = vsel %vm3081_vm4, %v391_v34, %v393_v16  ;;  %v3083_v36 = vsel %vm2298_vm8, 4294967295, %v3082_v36  ;;  %v450_v32 = vsel %vm3085_vm3, %v442_v47, %v444_v15  ;;  %vm3086_vm12 = vmmov %vm3085_vm3  ;;  %vm2306_vm10 = vcmp.ne.s16.totalorder %v546_v46, 0 }
  0xa5   :  { %3084 = vst [vmem:[#allocation2_spill] sm:$0xff] %v3083_v36  ;;  %v452_v48 = vsel %vm3086_vm12, %v446_v20, %v448_v31  ;;  %vm3087_vm15 = vmmov %vm3085_vm3  ;;  %v3088_v0 = vmov 0  ;;  %v643_v34 = vrot.slane %v438_v29, 6  ;;  %v642_v16 = vrot.slane %v437_v37, 6 }
  0xa6   :  { %v458_v62 = vsel %vm3087_vm15, %v448_v31, 0  ;;  %v3089_v0 = vsel %vm2306_vm10, 4294967295, %v3088_v0  ;;  %v440_v42 = vsel %vm2240_vm13, %v403_v63, 0  ;;  %v593_v54 = vrot.slane %v2293_v38, %v1975_v40  ;;  %v505_v57 = vpop.permute.xlu1 %504  ;;  %v503_v58 = vpop.permute.xlu0 %502 }
  0xa7   :  { %3090 = vst [vmem:[#allocation3_spill] sm:$0xff] %v3089_v0  ;;  %v439_v55 = vsel %vm2236_vm1, %v397_v50, 0  ;;  %v651_v56 = vrot.slane %v497_v51, 4  ;;  %v605_v59 = vrot.slane %v589_v39, %v1979_v43  ;;  %v496_v60 = vsel %vm2259_vm6, %v450_v32, 0 }
  0xa8   :  { %vm3091_vm7 = vnez %v3071_v30  ;;  %v499_v15 = vsel %vm2275_vm2, %v458_v62, 0  ;;  %vm3092_vm12 = vcmask 916480   ;;  %v645_v23 = vrot.slane %v440_v42, 6 }
  0xa9   :  { %v498_v20 = vsel %vm3091_vm7, %v452_v48, 0  ;;  %v510_v17 = vsel %vm3092_vm12, %v503_v58, %v505_v57  ;;  %v597_v33 = vrot.slane %v2293_v38, %v1979_v43  ;;  %v601_v46 = vrot.slane %v589_v39, %v1975_v40  ;;  %vm3096_vm14 = vmmov %vm3092_vm12 }
  0xaa   :  { %v552_v25 = vsel %vm2279_vm11, %v510_v17, 0  ;;  %v644_v29 = vrot.slane %v439_v55, 6  ;;  %vm3093_vm4 = vcmask 1041408   ;;  %v650_v31 = vrot.slane %v496_v60, 4  ;;  %v501_v32 = vpop.permute.xlu1 %500  ;;  %v507_v48 = vpop.permute.xlu0 %506  ;;  %vm3097_vm11 = vmmov %vm3092_vm12 }
  0xab   :  { %v659_v37 = vrot.slane %v552_v25, 2  ;;  %v702_v63 = vsel %vm3093_vm4, %v1817_v8, %v643_v34  ;;  %vm3094_vm3 = vmmov %vm3093_vm4  ;;  %v652_v50 = vrot.slane %v498_v20, 4  ;;  %v653_v51 = vrot.slane %v499_v15, 4 }
  0xac   :  { %v699_v47 = vsel %vm3094_vm3, %v1807_v4, %v642_v16  ;;  %vm3095_vm15 = vcmask 1043456   ;;  %v509_v42 = vsel %vm3092_vm12, %v501_v32, %v503_v58  ;;  %v511_v43 = vsel %vm3096_vm14, %v505_v57, %v507_v48  ;;  %vm3099_vm4 = vmmov %vm3094_vm3 }
  0xad   :  { %v712_v62 = vsel %vm3095_vm15, %v702_v63, %v651_v56  ;;  %v517_v40 = vsel %vm3097_vm11, %v507_v48, 0  ;;  %vm3098_vm7 = vcmask 1045504   ;;  %v551_v8 = vsel %vm2283_vm0, %v509_v42, 0  ;;  %vm3100_vm11 = vmmov %vm3094_vm3 }
  0xae   :  { %v721_v38 = vsel %vm3098_vm7, %v712_v62, %v659_v37  ;;  %v553_v4 = vsel %vm2298_vm8, %v511_v43, 0  ;;  %v554_v39 = vsel %vm2306_vm10, %v517_v40, 0  ;;  %v708_v34 = vsel %vm3099_vm4, %v1815_v7, %v645_v23  ;;  %v558_v58 = vpop.permute.xlu1 %557  ;;  %v556_v60 = vpop.permute.xlu0 %555  ;;  %vm3101_vm14 = vmmov %vm3095_vm15  ;;  %v1747_v43 = vld [vmem:[%s2870_s1] sm:$0xff]   ;;  %v1748_v40 = vld [vmem:[%s2870_s1 + $0x8] sm:$0xff]  }
  0xaf   :  { %788 = vmatprep.subr.bf16.mxu0 %v721_v38  ;;  %v658_v16 = vrot.slane %v551_v8, 2  ;;  %v660_v55 = vrot.slane %v553_v4, 2  ;;  %v661_v56 = vrot.slane %v554_v39, 2  ;;  %v705_v57 = vsel %vm3100_vm11, %v1805_v3, %v644_v29  ;;  %vm3102_vm7 = vmmov %vm3101_vm14 }
  0xb0   :  { %v710_v20 = vsel %vm3101_vm14, %v699_v47, %v650_v31  ;;  %v716_v15 = vsel %vm3102_vm7, %v708_v34, %v653_v51  ;;  %vm3103_vm3 = vmmov %vm3102_vm7  ;;  %vm2351_vm15 = vcmp.ne.s16.totalorder %v593_v54, 0  ;;  %v3104_v25 = vmov 0 }
  0xb1   :  { %v714_v17 = vsel %vm3103_vm3, %v705_v57, %v652_v50  ;;  %v3105_v25 = vsel %vm2351_vm15, 4294967295, %v3104_v25  ;;  %vm3107_vm12 = vcmask 908288   ;;  %vm3108_vm4 = vcmask 1045504  }
  0xb2   :  { %3106 = vst [vmem:[#allocation4_spill] sm:$0xff] %v3105_v25  ;;  %v564_v7 = vsel %vm3107_vm12, %v556_v60, %v558_v58  ;;  %v718_v23 = vsel %vm3108_vm4, %v710_v20, %v658_v16  ;;  %vm3109_vm8 = vmmov %vm3108_vm4  ;;  %vm2359_vm11 = vcmp.ne.s16.totalorder %v605_v59, 0  ;;  %v3111_v29 = vmov 0  ;;  %v562_v47 = vpop.permute.xlu1 %561  ;;  %v560_v31 = vpop.permute.xlu0 %559 }
  0xb3   :  { %v727_v37 = vsel %vm3109_vm8, %v716_v15, %v661_v56  ;;  %vm3110_vm10 = vmmov %vm3108_vm4  ;;  %789 = vmatpush1.bf16.msra.mxu0 %v718_v23  ;;  %v3112_v29 = vsel %vm2359_vm11, 4294967295, %v3111_v29  ;;  %vm2363_vm14 = vcmp.ne.s16.totalorder %v597_v33, 0  ;;  %v3114_v54 = vmov 0 }
  0xb4   :  { %v724_v3 = vsel %vm3110_vm10, %v714_v17, %v660_v55  ;;  %841 = vmatprep.subr.bf16.mxu1 %v727_v37  ;;  %3113 = vst [vmem:[#allocation5_spill] sm:$0xff] %v3112_v29  ;;  %v3115_v54 = vsel %vm2363_vm14, 4294967295, %v3114_v54  ;;  %vm2367_vm7 = vcmp.ne.s16.totalorder %v601_v46, 0  ;;  %v3117_v63 = vmov 0  ;;  %vm3120_vm10 = vmmov %vm3107_vm12 }
  0xb5   :  { %842 = vmatpush1.bf16.msra.mxu1 %v724_v3  ;;  %3116 = vst [vmem:[#allocation6_spill] sm:$0xff] %v3115_v54  ;;  %v3118_v63 = vsel %vm2367_vm7, 4294967295, %v3117_v63  ;;  %v610_v50 = vsel %vm2351_vm15, %v564_v7, 0  ;;  %v572_v51 = vsel %vm3120_vm10, %v562_v47, 0  ;;  %vm3121_vm8 = vmmov %vm3120_vm10  ;;  %vm3123_vm12 = vcmask 1041408  }
  0xb6   :  { %3119 = vst [vmem:[#allocation7_spill] sm:$0xff] %v3118_v63  ;;  %v565_v59 = vsel %vm3121_vm8, %v558_v58, %v560_v31  ;;  %vm3122_vm3 = vmmov %vm3121_vm8  ;;  %v613_v33 = vsel %vm2359_vm11, %v572_v51, 0  ;;  %vm767_vm8 = vcmask 293888   ;;  %vm3140_vm0 = vnez %v2986_v11 }
  0xb7   :  { %v566_v32 = vsel %vm3122_vm3, %v560_v31, %v562_v47  ;;  %v611_v46 = vsel %vm2363_vm14, %v565_v59, 0  ;;  %vm3124_vm4 = vmmov %vm3123_vm12 }
  0xb8   :  { %v612_v48 = vsel %vm2367_vm7, %v566_v32, 0  ;;  %1645 = vmatprep.subr.msk.bf16.mxu0 %vm3123_vm12, %v611_v46  ;;  %1648 = vmatprep.subr.msk.bf16.mxu1 %vm3124_vm4, %v613_v33  ;;  %vm3125_vm15 = vmmov %vm3124_vm4 }
  0xb9   :  { %v775_v62 = vsel %vm3125_vm15, %v610_v50, 0  ;;  %vm3126_vm10 = vmmov %vm3124_vm4 }
  0xba   :  { %v781_v42 = vsel %vm3126_vm10, %v612_v48, 0  ;;  %791 = vmatpush1.bf16.msra.mxu0 %v775_v62 }
  0xbb   :  { %844 = vmatpush1.bf16.msra.mxu1 %v781_v42 }
  0xbd   :  { %1646 = vmatmul.mubr.msk.bf16.vlgmr.msra.gmra.mrb[0].mxu0 %vm767_vm8, %v1747_v43 }
  0xbe   :  { %1649 = vmatmul.mubr.msk.bf16.vlgmr.msra.gmra.mrb[0].mxu1 %vm767_vm8, %v1747_v43  ;;  %828 = vmatprep.mubr.bf16.mxu0 %v2937_v2 }
  0xbf   :  { %881 = vmatprep.mubr.bf16.mxu1 %v2937_v2 }
  0xc3   :  { %v740_v38 = vpop.permute.xlu0 %739  ;;  %v745_v8 = vpop.permute.xlu1 %744 }
  0xc5   :  { %1647 = vmatmul.mubr.msk.bf16.gmra.mrb[4].mxu0 %vm767_vm8, %v1748_v40 }
  0xc6   :  { %1650 = vmatmul.mubr.msk.bf16.gmra.mrb[4].mxu1 %vm767_vm8, %v1748_v40 }
  0xc7   :  { %v750_v48 = vpop.permute.xlu1 %749  ;;  %v755_v43 = vpop.permute.xlu0 %754 }
 0x190   :  { %v820_v4 = vpop.f32.mrb[0].mxu0 }
 0x191   :  { %v873_v39 = vpop.f32.mrb[0].mxu1  ;;  %v821_v34 = vadd.f32 %v820_v4, %v740_v38  ;;  %v822_v55 = vpop.f32.mrb[1].mxu0 }
 0x192   :  { %v874_v16 = vadd.f32 %v873_v39, %v740_v38  ;;  %v875_v56 = vpop.f32.mrb[1].mxu1  ;;  %v823_v57 = vadd.f32 %v822_v55, %v740_v38  ;;  %v824_v60 = vpop.f32.mrb[2].mxu0 }
 0x193   :  { %v876_v58 = vadd.f32 %v875_v56, %v740_v38  ;;  %v877_v20 = vpop.f32.mrb[2].mxu1  ;;  %vm892_vm15 = vcmp.gt.f32.partialorder %v821_v34, 0.0  ;;  %v908_v15 = vmul.f32 0.01, %v821_v34  ;;  %v825_v37 = vadd.f32 %v824_v60, %v745_v8  ;;  %v826_v47 = vpop.f32.mrb[3].mxu0 }
 0x194   :  { %vm894_vm3 = vcmp.gt.f32.partialorder %v874_v16, 0.0  ;;  %v910_v17 = vmul.f32 0.01, %v874_v16  ;;  %vm893_vm12 = vcmp.gt.f32.partialorder %v823_v57, 0.0  ;;  %v909_v7 = vmul.f32 0.01, %v823_v57 }
 0x195   :  { %vm895_vm4 = vcmp.gt.f32.partialorder %v876_v58, 0.0  ;;  %v911_v23 = vmul.f32 0.01, %v876_v58  ;;  %v878_v3 = vadd.f32 %v877_v20, %v745_v8  ;;  %v879_v31 = vpop.f32.mrb[3].mxu1  ;;  %v924_v50 = vsel %vm892_vm15, %v821_v34, %v908_v15 }
 0x196   :  { %v926_v51 = vsel %vm894_vm3, %v874_v16, %v910_v17  ;;  %v827_v59 = vadd.f32 %v826_v47, %v745_v8  ;;  %v880_v32 = vadd.f32 %v879_v31, %v745_v8  ;;  %vm896_vm10 = vcmp.gt.f32.partialorder %v825_v37, 0.0 }
 0x197   :  { %v912_v33 = vmul.f32 0.01, %v825_v37  ;;  %vm898_vm8 = vcmp.gt.f32.partialorder %v878_v3, 0.0  ;;  %v914_v46 = vmul.f32 0.01, %v878_v3  ;;  %v925_v40 = vsel %vm893_vm12, %v823_v57, %v909_v7 }
 0x198   :  { %vm897_vm11 = vcmp.gt.f32.partialorder %v827_v59, 0.0  ;;  %v913_v62 = vmul.f32 0.01, %v827_v59  ;;  %vm899_vm7 = vcmp.gt.f32.partialorder %v880_v32, 0.0  ;;  %v915_v42 = vmul.f32 0.01, %v880_v32 }
 0x199   :  { %v927_v38 = vsel %vm895_vm4, %v876_v58, %v911_v23  ;;  %v928_v4 = vsel %vm896_vm10, %v825_v37, %v912_v33  ;;  %v930_v39 = vsel %vm898_vm8, %v878_v3, %v914_v46  ;;  %v830_v34 = vpop.f32.mrb[4].mxu0  ;;  %v883_v16 = vpop.f32.mrb[4].mxu1 }
 0x19a   :  { %v2396_v55 = vpack.c.bf16 %v928_v4, %v924_v50  ;;  %v2398_v8 = vpack.c.bf16 %v930_v39, %v926_v51  ;;  %v929_v56 = vsel %vm897_vm11, %v827_v59, %v913_v62  ;;  %v931_v60 = vsel %vm899_vm7, %v880_v32, %v915_v42  ;;  %v832_v20 = vpop.f32.mrb[5].mxu0  ;;  %v885_v15 = vpop.f32.mrb[5].mxu1 }
 0x19b   :  { %v2400_v17 = vpack.c.bf16 %v929_v56, %v925_v40  ;;  %v2402_v47 = vpack.c.bf16 %v931_v60, %v927_v38  ;;  %v831_v31 = vadd.f32 %v830_v34, %v750_v48  ;;  %v884_v57 = vadd.f32 %v883_v16, %v750_v48  ;;  %v834_v7 = vpop.f32.mrb[6].mxu0  ;;  %v887_v58 = vpop.f32.mrb[6].mxu1 }
 0x19c   :  { %v833_v23 = vadd.f32 %v832_v20, %v750_v48  ;;  %v886_v37 = vadd.f32 %v885_v15, %v750_v48  ;;  %v835_v3 = vadd.f32 %v834_v7, %v755_v43  ;;  %v888_v33 = vadd.f32 %v887_v58, %v755_v43  ;;  %956 = vrot.lane.b32.xlu1 %v2396_v55, %s1760_s23  ;;  %v836_v50 = vpop.f32.mrb[7].mxu0  ;;  %v889_v51 = vpop.f32.mrb[7].mxu1 }
 0x19d   :  { %v916_v59 = vmul.f32 0.01, %v831_v31  ;;  %958 = vrot.lane.b32.xlu0 %v2400_v17, %s1760_s23  ;;  %vm900_vm11 = vcmp.gt.f32.partialorder %v831_v31, 0.0  ;;  %v918_v32 = vmul.f32 0.01, %v884_v57  ;;  %vm902_vm7 = vcmp.gt.f32.partialorder %v884_v57, 0.0 }
 0x19e   :  { %vm901_vm15 = vcmp.gt.f32.partialorder %v833_v23, 0.0  ;;  %vm904_vm3 = vcmp.gt.f32.partialorder %v835_v3, 0.0  ;;  %v920_v46 = vmul.f32 0.01, %v835_v3  ;;  %v917_v62 = vmul.f32 0.01, %v833_v23 }
 0x19f   :  { %vm903_vm12 = vcmp.gt.f32.partialorder %v886_v37, 0.0  ;;  %vm906_vm4 = vcmp.gt.f32.partialorder %v888_v33, 0.0  ;;  %v922_v48 = vmul.f32 0.01, %v888_v33  ;;  %v932_v42 = vsel %vm900_vm11, %v831_v31, %v916_v59 }
 0x1a0   :  { %960 = vrot.lane.b32.xlu1 %v2398_v8, %s1760_s23  ;;  %v936_v40 = vsel %vm904_vm3, %v835_v3, %v920_v46  ;;  %v837_v38 = vadd.f32 %v836_v50, %v755_v43  ;;  %v890_v4 = vadd.f32 %v889_v51, %v755_v43  ;;  %v934_v39 = vsel %vm902_vm7, %v884_v57, %v918_v32 }
 0x1a1   :  { %962 = vrot.lane.b32.xlu0 %v2402_v47, %s1760_s23  ;;  %v919_v34 = vmul.f32 0.01, %v886_v37  ;;  %v2412_v16 = vpack.c.bf16 %v936_v40, %v932_v42  ;;  %v938_v56 = vsel %vm906_vm4, %v888_v33, %v922_v48  ;;  %v933_v31 = vsel %vm901_vm15, %v833_v23, %v917_v62  ;;  %v1751_v23 = vld [vmem:[%s2872_s2 + $0x4] ss:$12 sps:$4 sm:$0xff]  }
 0x1a2   :  { %v2414_v60 = vpack.c.bf16 %v938_v56, %v934_v39  ;;  %vm905_vm10 = vcmp.gt.f32.partialorder %v837_v38, 0.0  ;;  %v921_v20 = vmul.f32 0.01, %v837_v38  ;;  %vm907_vm8 = vcmp.gt.f32.partialorder %v890_v4, 0.0  ;;  %1393 = vmatprep.mubr.bf16.mxu0 %v1751_v23  ;;  %1499 = vmatprep.mubr.bf16.mxu1 %v1751_v23 }
 0x1a3   :  { %v923_v15 = vmul.f32 0.01, %v890_v4  ;;  %v935_v57 = vsel %vm903_vm12, %v886_v37, %v919_v34  ;;  %vm3127_vm11 = vcmask 138240   ;;  %vm3128_vm7 = vnez %v2994_v18  ;;  %v1301_v34 = vld [vmem:[%s2873_s4 + $0x8] sm:$0xff] }
 0x1a4   :  { %998 = vrot.lane.b32.xlu1 %v2396_v55, %s1758_s22  ;;  %v937_v43 = vsel %vm905_vm10, %v837_v38, %v921_v20  ;;  %vm3129_vm15 = vmmov %vm3127_vm11  ;;  %vm3130_vm3 = vnez %v2996_v19  ;;  %vm3132_vm4 = vnez %v3004_v35  ;;  %v1302_v20 = vld [vmem:[%s2873_s4 + $0x10] sm:$0xff] }
 0x1a5   :  { %1000 = vrot.lane.b32.xlu0 %v2400_v17, %s1758_s22  ;;  %v2422_v7 = vpack.c.bf16 %v937_v43, %v933_v31  ;;  %v939_v58 = vsel %vm907_vm8, %v890_v4, %v923_v15  ;;  %vm3131_vm12 = vmmov %vm3127_vm11  ;;  %vm3134_vm8 = vnez %v3006_v44  ;;  %v1300_v4 = vld [vmem:[%s2873_s4] sm:$0xff]  ;;  %v1303_v31 = vld [vmem:[%s2873_s4 + $0x18] sm:$0xff] }
 0x1a6   :  { %v2424_v3 = vpack.c.bf16 %v939_v58, %v935_v57  ;;  %vm3133_vm10 = vmmov %vm3127_vm11 }
 0x1a8   :  { %1002 = vrot.lane.b32.xlu1 %v2398_v8, %s1758_s22 }
 0x1a9   :  { %1004 = vrot.lane.b32.xlu0 %v2402_v47, %s1758_s22 }
 0x1ac   :  { %1040 = vrot.lane.b32.xlu1 %v2396_v55, %s1759_s0 }
 0x1ad   :  { %1042 = vrot.lane.b32.xlu0 %v2400_v17, %s1759_s0 }
 0x1b0   :  { %1044 = vrot.lane.b32.xlu1 %v2398_v8, %s1759_s0 }
 0x1b1   :  { %1046 = vrot.lane.b32.xlu0 %v2402_v47, %s1759_s0 }
 0x1b4   :  { %1082 = vrot.lane.b32.xlu1 %v2396_v55, %s1761_s24 }
 0x1b5   :  { %1084 = vrot.lane.b32.xlu0 %v2400_v17, %s1761_s24 }
 0x1b8   :  { %1086 = vrot.lane.b32.xlu1 %v2398_v8, %s1761_s24 }
 0x1b9   :  { %1088 = vrot.lane.b32.xlu0 %v2402_v47, %s1761_s24 }
 0x1bc   :  { %1124 = vrot.lane.b32.xlu1 %v2396_v55, %s1762_s25 }
 0x1bd   :  { %1126 = vrot.lane.b32.xlu0 %v2400_v17, %s1762_s25 }
 0x1c0   :  { %1128 = vrot.lane.b32.xlu1 %v2398_v8, %s1762_s25 }
 0x1c1   :  { %1130 = vrot.lane.b32.xlu0 %v2402_v47, %s1762_s25 }
 0x1c4   :  { %1166 = vrot.lane.b32.xlu1 %v2396_v55, %s1763_s26 }
 0x1c5   :  { %1168 = vrot.lane.b32.xlu0 %v2400_v17, %s1763_s26 }
 0x1c8   :  { %1170 = vrot.lane.b32.xlu1 %v2398_v8, %s1763_s26 }
 0x1c9   :  { %1172 = vrot.lane.b32.xlu0 %v2402_v47, %s1763_s26 }
 0x1cc   :  { %964 = vrot.lane.b32.xlu1 %v2412_v16, %s1760_s23 }
 0x1cd   :  { %966 = vrot.lane.b32.xlu0 %v2422_v7, %s1760_s23 }
 0x1d0   :  { %968 = vrot.lane.b32.xlu1 %v2414_v60, %s1760_s23 }
 0x1d1   :  { %970 = vrot.lane.b32.xlu0 %v2424_v3, %s1760_s23 }
 0x1d4   :  { %1006 = vrot.lane.b32.xlu1 %v2412_v16, %s1758_s22 }
 0x1d5   :  { %1008 = vrot.lane.b32.xlu0 %v2422_v7, %s1758_s22 }
 0x1d8   :  { %1010 = vrot.lane.b32.xlu1 %v2414_v60, %s1758_s22 }
 0x1d9   :  { %1012 = vrot.lane.b32.xlu0 %v2424_v3, %s1758_s22 }
 0x1dc   :  { %1048 = vrot.lane.b32.xlu1 %v2412_v16, %s1759_s0 }
 0x1dd   :  { %1050 = vrot.lane.b32.xlu0 %v2422_v7, %s1759_s0 }
 0x1e0   :  { %1052 = vrot.lane.b32.xlu1 %v2414_v60, %s1759_s0 }
 0x1e1   :  { %1054 = vrot.lane.b32.xlu0 %v2424_v3, %s1759_s0 }
 0x1e4   :  { %1090 = vrot.lane.b32.xlu1 %v2412_v16, %s1761_s24 }
 0x1e5   :  { %1092 = vrot.lane.b32.xlu0 %v2422_v7, %s1761_s24 }
 0x1e8   :  { %1094 = vrot.lane.b32.xlu1 %v2414_v60, %s1761_s24 }
 0x1e9   :  { %1096 = vrot.lane.b32.xlu0 %v2424_v3, %s1761_s24 }
 0x1ec   :  { %1208 = vrot.lane.b32.xlu1 %v2396_v55, %s1764_s27 }
 0x1ed   :  { %1210 = vrot.lane.b32.xlu0 %v2400_v17, %s1764_s27 }
 0x1f0   :  { %1132 = vrot.lane.b32.xlu1 %v2412_v16, %s1762_s25 }
 0x1f1   :  { %1214 = vrot.lane.b32.xlu0 %v2402_v47, %s1764_s27 }
 0x1f4   :  { %1136 = vrot.lane.b32.xlu1 %v2414_v60, %s1762_s25 }
 0x1f5   :  { %1134 = vrot.lane.b32.xlu0 %v2422_v7, %s1762_s25 }
 0x1f8   :  { %1174 = vrot.lane.b32.xlu1 %v2412_v16, %s1763_s26 }
 0x1f9   :  { %1138 = vrot.lane.b32.xlu0 %v2424_v3, %s1762_s25 }
 0x1fc   :  { %1178 = vrot.lane.b32.xlu1 %v2414_v60, %s1763_s26 }
 0x1fd   :  { %1176 = vrot.lane.b32.xlu0 %v2422_v7, %s1763_s26 }
 0x200   :  { %1212 = vrot.lane.b32.xlu1 %v2398_v8, %s1764_s27 }
 0x201   :  { %1180 = vrot.lane.b32.xlu0 %v2424_v3, %s1763_s26 }
 0x204   :  { %1216 = vrot.lane.b32.xlu1 %v2412_v16, %s1764_s27 }
 0x205   :  { %1218 = vrot.lane.b32.xlu0 %v2422_v7, %s1764_s27 }
 0x208   :  { %1220 = vrot.lane.b32.xlu1 %v2414_v60, %s1764_s27 }
 0x209   :  { %1222 = vrot.lane.b32.xlu0 %v2424_v3, %s1764_s27 }
 0x20c   :  { %1250 = vrot.lane.b32.xlu1 %v2396_v55, %s1765_s28 }
 0x20d   :  { %1252 = vrot.lane.b32.xlu0 %v2400_v17, %s1765_s28 }
 0x20e   :  { %v957_v37 = vpop.permute.xlu1 %956 }
 0x20f   :  { %v985_v33 = vsel %vm3127_vm11, 0, %v957_v37  ;;  %v959_v50 = vpop.permute.xlu0 %958  ;;  %vm3135_vm11 = vmmov %vm3133_vm10 }
 0x210   :  { %v990_v51 = vsel %vm3128_vm7, %v985_v33, 0  ;;  %v972_v59 = vsel %vm3129_vm15, %v957_v37, %v959_v50  ;;  %1254 = vrot.lane.b32.xlu1 %v2398_v8, %s1765_s28  ;;  %vm3136_vm15 = vmmov %vm3133_vm10 }
 0x211   :  { %1256 = vrot.lane.b32.xlu0 %v2402_v47, %s1765_s28  ;;  %1657 = vmatprep.subr.msk.bf16.mxu0 %vm3130_vm3, %v972_v59  ;;  %vm3139_vm14 = vmmov %vm3135_vm11 }
 0x212   :  { %v961_v32 = vpop.permute.xlu1 %960  ;;  %1362 = vmatpush1.bf16.msra.mxu0 %v990_v51 }
 0x213   :  { %v973_v46 = vsel %vm3131_vm12, %v959_v50, %v961_v32  ;;  %v963_v62 = vpop.permute.xlu0 %962  ;;  %vm3137_vm12 = vcmask 130048  }
 0x214   :  { %v992_v48 = vsel %vm3132_vm4, %v973_v46, 0  ;;  %v974_v42 = vsel %vm3133_vm10, %v961_v32, %v963_v62  ;;  %1258 = vrot.lane.b32.xlu1 %v2412_v16, %s1765_s28  ;;  %vm3138_vm10 = vmmov %vm3137_vm12 }
 0x215   :  { %1260 = vrot.lane.b32.xlu0 %v2422_v7, %s1765_s28  ;;  %1675 = vmatprep.subr.msk.bf16.mxu1 %vm3134_vm8, %v974_v42 }
 0x216   :  { %v999_v40 = vpop.permute.xlu1 %998  ;;  %1468 = vmatpush1.bf16.msra.mxu1 %v992_v48 }
 0x217   :  { %v1001_v38 = vpop.permute.xlu0 %1000  ;;  %v1027_v63 = vsel %vm3137_vm12, 0, %v999_v40  ;;  %vm3146_vm12 = vnez %v2984_v10 }
 0x218   :  { %1262 = vrot.lane.b32.xlu1 %v2414_v60, %s1765_s28  ;;  %v1014_v54 = vsel %vm3138_vm10, %v999_v40, %v1001_v38 }
 0x219   :  { %1264 = vrot.lane.b32.xlu0 %v2424_v3, %s1765_s28 }
 0x21a   :  { %v1003_v39 = vpop.permute.xlu1 %1002 }
 0x21b   :  { %v1005_v56 = vpop.permute.xlu0 %1004 }
 0x21c   :  { %1306 = vperm.xlu1 %1744, %v1300_v4  }
 0x21d   :  { %1311 = vperm.xlu0 %1743, %v1301_v34  }
 0x21e   :  { %v1041_v15 = vpop.permute.xlu1 %1040 }
 0x21f   :  { %v1043_v43 = vpop.permute.xlu0 %1042 }
 0x220   :  { %1316 = vperm.xlu1 %1744, %v1302_v20  }
 0x221   :  { %1321 = vperm.xlu0 %1743, %v1303_v31  }
 0x222   :  { %v1045_v57 = vpop.permute.xlu1 %1044 }
 0x223   :  { %v1047_v58 = vpop.permute.xlu0 %1046 }
 0x226   :  { %v2569_v23 = vpop.permute.xlu1 %1082 }
 0x227   :  { %v2571_v37 = vpop.permute.xlu0 %1084 }
 0x22a   :  { %v2573_v33 = vpop.permute.xlu1 %1086 }
 0x22b   :  { %v2575_v50 = vpop.permute.xlu0 %1088 }
 0x22e   :  { %v2577_v51 = vpop.permute.xlu1 %1124 }
 0x22f   :  { %v2579_v59 = vpop.permute.xlu0 %1126 }
 0x232   :  { %v2581_v32 = vpop.permute.xlu1 %1128 }
 0x233   :  { %v2583_v46 = vpop.permute.xlu0 %1130 }
 0x236   :  { %v2585_v62 = vpop.permute.xlu1 %1166 }
 0x237   :  { %v2587_v48 = vpop.permute.xlu0 %1168 }
 0x23a   :  { %v2589_v42 = vpop.permute.xlu1 %1170 }
 0x23b   :  { %v2591_v4 = vpop.permute.xlu0 %1172 }
 0x23e   :  { %v965_v34 = vpop.permute.xlu1 %964 }
 0x23f   :  { %v988_v20 = vsel %vm3135_vm11, 0, %v965_v34  ;;  %v967_v31 = vpop.permute.xlu0 %966 }
 0x240   :  { %v994_v2 = vsel %vm3128_vm7, %v988_v20, 0  ;;  %v975_v29 = vsel %vm3136_vm15, %v965_v34, %v967_v31  ;;  %vm3141_vm7 = vmmov %vm3135_vm11  ;;  %vm3142_vm11 = vnez %v2982_v9 }
 0x241   :  { %1658 = vmatprep.subr.msk.bf16.mxu0 %vm3130_vm3, %v975_v29  ;;  %v1032_v19 = vsel %vm3142_vm11, %v1027_v63, 0  ;;  %vm3143_vm3 = vmmov %vm3138_vm10  ;;  %vm3149_vm10 = vcmask 121856  }
 0x242   :  { %v969_v25 = vpop.permute.xlu1 %968  ;;  %1364 = vmatpush1.bf16.msra.mxu0 %v994_v2  ;;  %v1015_v29 = vsel %vm3143_vm3, %v1001_v38, %v1003_v39  ;;  %vm3144_vm15 = vmmov %vm3143_vm3 }
 0x243   :  { %v976_v36 = vsel %vm3139_vm14, %v967_v31, %v969_v25  ;;  %1659 = vmatprep.subr.msk.bf16.mxu0 %vm3140_vm0, %v1014_v54  ;;  %v971_v0 = vpop.permute.xlu0 %970  ;;  %v1016_v2 = vsel %vm3144_vm15, %v1003_v39, %v1005_v56  ;;  %vm3145_vm14 = vmmov %vm3143_vm3  ;;  %vm3151_vm15 = vnez %v2992_v14 }
 0x244   :  { %v996_v18 = vsel %vm3132_vm4, %v976_v36, 0  ;;  %v977_v34 = vsel %vm3141_vm7, %v969_v25, %v971_v0  ;;  %vm3147_vm4 = vmmov %vm3143_vm3  ;;  %v1069_v25 = vsel %vm3149_vm10, 0, %v1041_v15 }
 0x245   :  { %1676 = vmatprep.subr.msk.bf16.mxu1 %vm3134_vm8, %v977_v34  ;;  %vm3148_vm8 = vnez %v2988_v12  ;;  %vm3150_vm7 = vmmov %vm3149_vm10 }
 0x246   :  { %v1007_v40 = vpop.permute.xlu1 %1006  ;;  %1366 = vmatpush1.bf16.msra.mxu0 %v1032_v19  ;;  %1470 = vmatpush1.bf16.msra.mxu1 %v996_v18  ;;  %v1034_v44 = vsel %vm3148_vm8, %v1015_v29, 0  ;;  %v1056_v63 = vsel %vm3150_vm7, %v1041_v15, %v1043_v43 }
 0x247   :  { %v1030_v54 = vsel %vm3145_vm14, 0, %v1007_v40  ;;  %1677 = vmatprep.subr.msk.bf16.mxu1 %vm3146_vm12, %v1016_v2  ;;  %v1009_v35 = vpop.permute.xlu0 %1008  ;;  %vm3154_vm14 = vmmov %vm3150_vm7 }
 0x248   :  { %v1036_v36 = vsel %vm3142_vm11, %v1030_v54, 0  ;;  %v1017_v0 = vsel %vm3147_vm4, %v1007_v40, %v1009_v35  ;;  %vm3152_vm11 = vmmov %vm3143_vm3  ;;  %v1057_v15 = vsel %vm3154_vm14, %v1043_v43, %v1045_v57 }
 0x249   :  { %1660 = vmatprep.subr.msk.bf16.mxu0 %vm3140_vm0, %v1017_v0  ;;  %vm3153_vm0 = vnez %v2990_v13  ;;  %vm3155_vm4 = vmmov %vm3150_vm7  ;;  %vm3157_vm7 = vnez %v3002_v28 }
 0x24a   :  { %v1011_v38 = vpop.permute.xlu1 %1010  ;;  %1368 = vmatpush1.bf16.msra.mxu0 %v1036_v36  ;;  %1472 = vmatpush1.bf16.msra.mxu1 %v1034_v44  ;;  %v1074_v11 = vsel %vm3153_vm0, %v1069_v25, 0  ;;  %v1058_v31 = vsel %vm3155_vm4, %v1045_v57, %v1047_v58  ;;  %vm3156_vm10 = vmmov %vm3155_vm4 }
 0x24b   :  { %v1018_v39 = vsel %vm3143_vm3, %v1009_v35, %v1011_v38  ;;  %1661 = vmatprep.subr.msk.bf16.mxu0 %vm3151_vm15, %v1056_v63  ;;  %v1013_v9 = vpop.permute.xlu0 %1012  ;;  %vm3160_vm3 = vcmask 7168   ;;  %vm3162_vm14 = vmmov %vm3155_vm4 }
 0x24c   :  { %v1038_v56 = vsel %vm3148_vm8, %v1018_v39, 0  ;;  %v1019_v20 = vsel %vm3152_vm11, %v1011_v38, %v1013_v9  ;;  %vm3158_vm8 = vmmov %vm3155_vm4  ;;  %v1111_v43 = vsel %vm3160_vm3, 0, %v2569_v23 }
 0x24d   :  { %1678 = vmatprep.subr.msk.bf16.mxu1 %vm3146_vm12, %v1019_v20  ;;  %vm3159_vm12 = vnez %v3000_v27  ;;  %vm3161_vm11 = vmmov %vm3160_vm3 }
 0x24e   :  { %v1049_v18 = vpop.permute.xlu1 %1048  ;;  %1370 = vmatpush1.bf16.msra.mxu0 %v1074_v11  ;;  %1474 = vmatpush1.bf16.msra.mxu1 %v1038_v56  ;;  %v1076_v10 = vsel %vm3159_vm12, %v1057_v15, 0  ;;  %v1098_v57 = vsel %vm3161_vm11, %v2569_v23, %v2571_v37  ;;  %vm3171_vm11 = vnez %v3015_v21 }
 0x24f   :  { %v1072_v34 = vsel %vm3156_vm10, 0, %v1049_v18  ;;  %1679 = vmatprep.subr.msk.bf16.mxu1 %vm3157_vm7, %v1058_v31  ;;  %v1051_v12 = vpop.permute.xlu0 %1050  ;;  %vm3166_vm10 = vmmov %vm3160_vm3 }
 0x250   :  { %v1078_v19 = vsel %vm3153_vm0, %v1072_v34, 0  ;;  %v1059_v29 = vsel %vm3158_vm8, %v1049_v18, %v1051_v12  ;;  %vm3163_vm0 = vnez %v3013_v53  ;;  %v1099_v23 = vsel %vm3166_vm10, %v2571_v37, %v2573_v33  ;;  %vm3167_vm8 = vmmov %vm3160_vm3 }
 0x251   :  { %1662 = vmatprep.subr.msk.bf16.mxu0 %vm3151_vm15, %v1059_v29  ;;  %vm3164_vm15 = vmmov %vm3155_vm4  ;;  %vm3165_vm4 = vnez %v3011_v52  ;;  %v1100_v35 = vsel %vm3167_vm8, %v2573_v33, %v2575_v50  ;;  %v1118_v37 = vsel %vm3171_vm11, %v1099_v23, 0  ;;  %vm3176_vm10 = vnez %v3061_v5 }
 0x252   :  { %v1053_v58 = vpop.permute.xlu1 %1052  ;;  %1372 = vmatpush1.bf16.msra.mxu0 %v1078_v19  ;;  %1476 = vmatpush1.bf16.msra.mxu1 %v1076_v10  ;;  %v1116_v54 = vsel %vm3165_vm4, %v1111_v43, 0 }
 0x253   :  { %v1060_v13 = vsel %vm3162_vm14, %v1051_v12, %v1053_v58  ;;  %1663 = vmatprep.subr.msk.bf16.mxu0 %vm3163_vm0, %v1098_v57  ;;  %v1055_v2 = vpop.permute.xlu0 %1054 }
 0x254   :  { %v1080_v14 = vsel %vm3159_vm12, %v1060_v13, 0  ;;  %v1061_v40 = vsel %vm3164_vm15, %v1053_v58, %v1055_v2  ;;  %vm3168_vm12 = vmmov %vm3160_vm3  ;;  %vm3169_vm3 = vnez %v3017_v41  ;;  %v3197_v13 = vld [vmem:[#allocation3_spill] sm:$0xff] }
 0x255   :  { %1680 = vmatprep.subr.msk.bf16.mxu1 %vm3157_vm7, %v1061_v40  ;;  %vm3170_vm7 = vmmov %vm3167_vm8 }
 0x256   :  { %v1091_v36 = vpop.permute.xlu1 %1090  ;;  %1374 = vmatpush1.bf16.msra.mxu0 %v1116_v54  ;;  %1478 = vmatpush1.bf16.msra.mxu1 %v1080_v14  ;;  %vm3172_vm14 = vmmov %vm3170_vm7  ;;  %v3199_v14 = vld [vmem:[#allocation2_spill] sm:$0xff] }
 0x257   :  { %v1114_v27 = vsel %vm3168_vm12, 0, %v1091_v36  ;;  %1681 = vmatprep.subr.msk.bf16.mxu1 %vm3169_vm3, %v1100_v35  ;;  %v1093_v0 = vpop.permute.xlu0 %1092  ;;  %vm3173_vm15 = vmmov %vm3170_vm7 }
 0x258   :  { %v1120_v28 = vsel %vm3165_vm4, %v1114_v27, 0  ;;  %v1101_v44 = vsel %vm3170_vm7, %v1091_v36, %v1093_v0 }
 0x259   :  { %1664 = vmatprep.subr.msk.bf16.mxu0 %vm3163_vm0, %v1101_v44  ;;  %vm3174_vm0 = vcmask 1039360  }
 0x25a   :  { %v1095_v33 = vpop.permute.xlu1 %1094  ;;  %1376 = vmatpush1.bf16.msra.mxu0 %v1120_v28  ;;  %1480 = vmatpush1.bf16.msra.mxu1 %v1118_v37  ;;  %vm3175_vm4 = vmmov %vm3174_vm0 }
 0x25b   :  { %v1102_v50 = vsel %vm3172_vm14, %v1093_v0, %v1095_v33  ;;  %1377 = vmatprep.subr.bf16.mxu0 %v2400_v17  ;;  %v1097_v25 = vpop.permute.xlu0 %1096  ;;  %v1140_v17 = vsel %vm3174_vm0, %v2577_v51, %v2579_v59  ;;  %v1141_v21 = vsel %vm3175_vm4, %v2579_v59, %v2581_v32  ;;  %vm3177_vm8 = vmmov %vm3174_vm0  ;;  %v1749_v0 = vld [vmem:[%s2872_s2] ss:$12 sps:$4 sm:$0xff]  }
 0x25c   :  { %v1122_v52 = vsel %vm3171_vm11, %v1102_v50, 0  ;;  %v1103_v63 = vsel %vm3173_vm15, %v1095_v33, %v1097_v25  ;;  %vm3178_vm12 = vmmov %vm3174_vm0  ;;  %vm3181_vm11 = vcmask 924672  }
 0x25d   :  { %1682 = vmatprep.subr.msk.bf16.mxu1 %vm3169_vm3, %v1103_v63  ;;  %vm3179_vm3 = vmmov %vm3174_vm0 }
 0x25e   :  { %v1209_v38 = vpop.permute.xlu1 %1208  ;;  %1378 = vmatpush1.bf16.msra.mxu0 %v2396_v55  ;;  %1482 = vmatpush1.bf16.msra.mxu1 %v1122_v52  ;;  %v1158_v55 = vsel %vm3176_vm10, %v1140_v17, 0  ;;  %vm3180_vm7 = vmmov %vm3174_vm0  ;;  %v3207_v52 = vld [vmem:[#allocation4_spill] sm:$0xff]  ;;  %v3211_v17 = vld [vmem:[#allocation6_spill] sm:$0xff] }
 0x25f   :  { %1379 = vmatprep.subr.bf16.mxu0 %v2422_v7  ;;  %1483 = vmatprep.subr.bf16.mxu1 %v2402_v47  ;;  %v1211_v53 = vpop.permute.xlu0 %1210  ;;  %v1142_v47 = vsel %vm3177_vm8, %v2581_v32, %v2583_v46  ;;  %v1153_v7 = vsel %vm3178_vm12, %v2583_v46, 0  ;;  %vm3182_vm14 = vmmov %vm3181_vm11  ;;  %vm3189_vm8 = vcmask 916480  }
 0x260   :  { %v1160_v59 = vsel %vm2236_vm1, %v1142_v47, 0  ;;  %v1183_v46 = vsel %vm3182_vm14, %v2587_v48, %v2589_v42  ;;  %vm3183_vm15 = vmmov %vm3174_vm0 }
 0x261   :  { %vm3190_vm12 = vmmov %vm3189_vm8 }
 0x262   :  { %v1133_v39 = vpop.permute.xlu1 %1132  ;;  %1380 = vmatpush1.bf16.msra.mxu0 %v2412_v16  ;;  %1484 = vmatpush1.bf16.msra.mxu1 %v2398_v8 }
 0x263   :  { %1665 = vmatprep.subr.msk.bf16.mxu0 %vm2228_vm9, %v1141_v21  ;;  %1485 = vmatprep.subr.bf16.mxu1 %v2424_v3  ;;  %v1215_v41 = vpop.permute.xlu0 %1214  ;;  %v1754_v21 = vld [vmem:[%s2872_s2 + $0x18] ss:$12 sps:$4 sm:$0xff]  }
 0x266   :  { %v1137_v51 = vpop.permute.xlu1 %1136  ;;  %1382 = vmatpush1.bf16.msra.mxu0 %v1158_v55  ;;  %1486 = vmatpush1.bf16.msra.mxu1 %v2414_v60  ;;  %v1182_v60 = vsel %vm3181_vm11, %v2585_v62, %v2587_v48  ;;  %v3215_v55 = vld [vmem:[#allocation5_spill] sm:$0xff] }
 0x267   :  { %1683 = vmatprep.subr.msk.bf16.mxu1 %vm2240_vm13, %v1153_v7  ;;  %v1135_v8 = vpop.permute.xlu0 %1134  ;;  %v1200_v20 = vsel %vm2259_vm6, %v1182_v60, 0 }
 0x268   :  { %v1143_v16 = vsel %vm3179_vm3, %v1133_v39, %v1135_v8  ;;  %v1144_v3 = vsel %vm3180_vm7, %v1135_v8, %v1137_v51  ;;  %v3213_v39 = vld [vmem:[#allocation7_spill] sm:$0xff]  ;;  %v3218_v8 = vmov 0  }
 0x269   :  { %v1162_v32 = vsel %vm3176_vm10, %v1143_v16, 0  ;;  %1666 = vmatprep.subr.msk.bf16.mxu0 %vm2228_vm9, %v1144_v3  ;;  %vm3184_vm9 = vmmov %vm3181_vm11  ;;  %vm3193_vm11 = vnez %v3077_v26 }
 0x26a   :  { %v1175_v9 = vpop.permute.xlu1 %1174  ;;  %1384 = vmatpush1.bf16.msra.mxu0 %v1162_v32  ;;  %1488 = vmatpush1.bf16.msra.mxu1 %v1160_v59  ;;  %v1184_v48 = vsel %vm3184_vm9, %v2589_v42, %v2591_v4  ;;  %vm3185_vm4 = vmmov %vm3184_vm9 }
 0x26b   :  { %1667 = vmatprep.subr.msk.bf16.mxu0 %vm2246_vm5, %v1183_v46  ;;  %v1139_v56 = vpop.permute.xlu0 %1138  ;;  %v1195_v11 = vsel %vm3185_vm4, %v2591_v4, 0  ;;  %vm3186_vm10 = vmmov %vm3185_vm4  ;;  %v1224_v4 = vsel %vm3189_vm8, %v1209_v38, %v1211_v53 }
 0x26c   :  { %v1145_v5 = vsel %vm3183_vm15, %v1137_v51, %v1139_v56  ;;  %v1156_v1 = vsel %vm3174_vm0, %v1139_v56, 0  ;;  %vm3198_vm15 = vnez %v3197_v13  ;;  %vm3200_vm0 = vnez %v3199_v14 }
 0x26d   :  { %v1164_v62 = vsel %vm2236_vm1, %v1145_v5, 0  ;;  %1684 = vmatprep.subr.msk.bf16.mxu1 %vm2240_vm13, %v1156_v1  ;;  %vm3187_vm1 = vmmov %vm3185_vm4  ;;  %vm3188_vm13 = vnez %v3071_v30  ;;  %v1756_v5 = vld [vmem:[%s2872_s2 + $0x20] ss:$12 sps:$4 sm:$0xff]  }
 0x26e   :  { %v1179_v15 = vpop.permute.xlu1 %1178  ;;  %1386 = vmatpush1.bf16.msra.mxu0 %v1200_v20  ;;  %1490 = vmatpush1.bf16.msra.mxu1 %v1164_v62  ;;  %v1202_v6 = vsel %vm3188_vm13, %v1184_v48, 0  ;;  %vm3191_vm3 = vmmov %vm3187_vm1 }
 0x26f   :  { %1685 = vmatprep.subr.msk.bf16.mxu1 %vm2275_vm2, %v1195_v11  ;;  %v1177_v31 = vpop.permute.xlu0 %1176  ;;  %vm3192_vm7 = vmmov %vm3187_vm1 }
 0x270   :  { %v1185_v49 = vsel %vm3186_vm10, %v1175_v9, %v1177_v31  ;;  %v1186_v18 = vsel %vm3187_vm1, %v1177_v31, %v1179_v15  ;;  %vm3205_vm1 = vcmask 908288   ;;  %v1755_v9 = vld [vmem:[%s2872_s2 + $0x8] ss:$12 sps:$4 sm:$0xff]  }
 0x271   :  { %v1204_v42 = vsel %vm2259_vm6, %v1185_v49, 0  ;;  %1668 = vmatprep.subr.msk.bf16.mxu0 %vm2246_vm5, %v1186_v18  ;;  %vm3194_vm6 = vnez %v3079_v61  ;;  %vm3195_vm5 = vmmov %vm3189_vm8  ;;  %v1752_v61 = vld [vmem:[%s2872_s2 + $0x1c] ss:$12 sps:$4 sm:$0xff]   ;;  %vm3208_vm8 = vnez %v3207_v52 }
 0x272   :  { %v1213_v34 = vpop.permute.xlu1 %1212  ;;  %1388 = vmatpush1.bf16.msra.mxu0 %v1204_v42  ;;  %1492 = vmatpush1.bf16.msra.mxu1 %v1202_v6  ;;  %v1242_v45 = vsel %vm3194_vm6, %v1224_v4, 0  ;;  %v1237_v43 = vsel %vm3195_vm5, %v1215_v41, 0  ;;  %vm3196_vm14 = vmmov %vm3195_vm5 }
 0x273   :  { %v1225_v12 = vsel %vm3190_vm12, %v1211_v53, %v1213_v34  ;;  %v1181_v19 = vpop.permute.xlu0 %1180  ;;  %v1226_v57 = vsel %vm3196_vm14, %v1213_v34, %v1215_v41  ;;  %vm3201_vm9 = vmmov %vm3195_vm5 }
 0x274   :  { %v1187_v29 = vsel %vm3191_vm3, %v1179_v15, %v1181_v19  ;;  %v1198_v10 = vsel %vm3192_vm7, %v1181_v19, 0  ;;  %1669 = vmatprep.subr.msk.bf16.mxu0 %vm3193_vm11, %v1225_v12  ;;  %v1244_v40 = vsel %vm3200_vm0, %v1226_v57, 0  ;;  %vm3202_vm4 = vmmov %vm3195_vm5  ;;  %vm3212_vm7 = vnez %v3211_v17 }
 0x275   :  { %v1206_v24 = vsel %vm3188_vm13, %v1187_v29, 0  ;;  %1686 = vmatprep.subr.msk.bf16.mxu1 %vm2275_vm2, %v1198_v10  ;;  %vm3203_vm2 = vmmov %vm3202_vm4 }
 0x276   :  { %v1217_v58 = vpop.permute.xlu1 %1216  ;;  %1390 = vmatpush1.bf16.msra.mxu0 %v1242_v45  ;;  %1494 = vmatpush1.bf16.msra.mxu1 %v1206_v24  ;;  %vm3204_vm10 = vmmov %vm3203_vm2 }
 0x277   :  { %1687 = vmatprep.subr.msk.bf16.mxu1 %vm3198_vm15, %v1237_v43  ;;  %v1219_v2 = vpop.permute.xlu0 %1218  ;;  %vm3206_vm13 = vmmov %vm3205_vm1 }
 0x278   :  { %v1227_v30 = vsel %vm3201_vm9, %v1217_v58, %v1219_v2  ;;  %vm3209_vm12 = vmmov %vm3205_vm1  ;;  %vm1354_vm9 = vcmask 261120  }
 0x279   :  { %v1246_v35 = vsel %vm3194_vm6, %v1227_v30, 0  ;;  %vm3210_vm3 = vmmov %vm3205_vm1  ;;  %vm3216_vm6 = vnez %v3215_v55 }
 0x27a   :  { %v1221_v54 = vpop.permute.xlu1 %1220  ;;  %1496 = vmatpush1.bf16.msra.mxu1 %v1244_v40  ;;  %vm3217_vm5 = vmmov %vm3205_vm1 }
 0x27b   :  { %v1228_v22 = vsel %vm3202_vm4, %v1219_v2, %v1221_v54  ;;  %v1223_v23 = vpop.permute.xlu0 %1222  ;;  %vm3219_vm14 = vmmov %vm3205_vm1 }
 0x27c   :  { %v1229_v36 = vsel %vm3203_vm2, %v1221_v54, %v1223_v23  ;;  %v1240_v27 = vsel %vm3204_vm10, %v1223_v23, 0  ;;  %1670 = vmatprep.subr.msk.bf16.mxu0 %vm3193_vm11, %v1228_v22  ;;  %vm3214_vm11 = vnez %v3213_v39 }
 0x27d   :  { %v1248_v28 = vsel %vm3200_vm0, %v1229_v36, 0  ;;  %1392 = vmatpush1.bf16.msra.mxu0 %v1246_v35  ;;  %1688 = vmatprep.subr.msk.bf16.mxu1 %vm3198_vm15, %v1240_v27  ;;  %vm3220_vm15 = vmmov %vm3205_vm1 }
 0x27e   :  { %v1251_v44 = vpop.permute.xlu1 %1250  ;;  %1498 = vmatpush1.bf16.msra.mxu1 %v1248_v28  ;;  %vm3221_vm0 = vmmov %vm3205_vm1 }
 0x27f   :  { %v1253_v37 = vpop.permute.xlu0 %1252 }
 0x280   :  { %1394 = vmatmul.mubr.bf16.vlgmr.msra.gmra.mrb[8].mxu0 %v1749_v0  ;;  %v1266_v26 = vsel %vm3205_vm1, %v1251_v44, %v1253_v37 }
 0x281   :  { %1500 = vmatmul.mubr.bf16.vlgmr.msra.gmra.mrb[8].mxu1 %v1749_v0  ;;  %1403 = vmatprep.mubr.bf16.mxu0 %v1752_v61  ;;  %v1284_v63 = vsel %vm3208_vm8, %v1266_v26, 0 }
 0x282   :  { %v1255_v33 = vpop.permute.xlu1 %1254  ;;  %1509 = vmatprep.mubr.bf16.mxu1 %v1752_v61 }
 0x283   :  { %v1267_v50 = vsel %vm3206_vm13, %v1253_v37, %v1255_v33  ;;  %v1257_v25 = vpop.permute.xlu0 %1256 }
 0x284   :  { %v1268_v38 = vsel %vm3209_vm12, %v1255_v33, %v1257_v25  ;;  %v1279_v53 = vsel %vm3210_vm3, %v1257_v25, 0  ;;  %1671 = vmatprep.subr.msk.bf16.mxu0 %vm3212_vm7, %v1267_v50 }
 0x285   :  { %v1286_v41 = vsel %vm3214_vm11, %v1268_v38, 0  ;;  %1415 = vmatpush1.bf16.msra.mxu0 %v1284_v63  ;;  %1689 = vmatprep.subr.msk.bf16.mxu1 %vm3216_vm6, %v1279_v53 }
 0x286   :  { %v1259_v47 = vpop.permute.xlu1 %1258  ;;  %1521 = vmatpush1.bf16.msra.mxu1 %v1286_v41 }
 0x287   :  { %v1261_v7 = vpop.permute.xlu0 %1260 }
 0x288   :  { %1404 = vmatmul.mubr.bf16.gmra.mrb[12].mxu0 %v1754_v21  ;;  %v1269_v51 = vsel %vm3217_vm5, %v1259_v47, %v1261_v7 }
 0x289   :  { %1510 = vmatmul.mubr.bf16.gmra.mrb[12].mxu1 %v1754_v21  ;;  %1446 = vmatprep.mubr.bf16.mxu0 %v3218_v8  ;;  %v1288_v32 = vsel %vm3208_vm8, %v1269_v51, 0 }
 0x28a   :  { %v1263_v16 = vpop.permute.xlu1 %1262  ;;  %1552 = vmatprep.mubr.bf16.mxu1 %v3218_v8 }
 0x28b   :  { %v1270_v3 = vsel %vm3219_vm14, %v1261_v7, %v1263_v16  ;;  %v1265_v59 = vpop.permute.xlu0 %1264 }
 0x28c   :  { %v1271_v60 = vsel %vm3220_vm15, %v1263_v16, %v1265_v59  ;;  %v1282_v46 = vsel %vm3221_vm0, %v1265_v59, 0  ;;  %1672 = vmatprep.subr.msk.bf16.mxu0 %vm3212_vm7, %v1270_v3 }
 0x28d   :  { %v1290_v56 = vsel %vm3214_vm11, %v1271_v60, 0  ;;  %1417 = vmatpush1.bf16.msra.mxu0 %v1288_v32  ;;  %1690 = vmatprep.subr.msk.bf16.mxu1 %vm3216_vm6, %v1282_v46 }
 0x28e   :  { %1523 = vmatpush1.bf16.msra.mxu1 %v1290_v56 }
 0x290   :  { %1673 = vmatmul.mubr.msk.bf16.vlgmr.msra.gmra.mrb[8].mxu0 %vm1354_vm9, %v1755_v9 }
 0x291   :  { %1691 = vmatmul.mubr.msk.bf16.vlgmr.msra.gmra.mrb[8].mxu1 %vm1354_vm9, %v1755_v9  ;;  %1456 = vmatprep.mubr.bf16.mxu0 %v3218_v8 }
 0x292   :  { %1562 = vmatprep.mubr.bf16.mxu1 %v3218_v8 }
 0x298   :  { %1674 = vmatmul.mubr.msk.bf16.gmra.mrb[12].mxu0 %vm1354_vm9, %v1756_v5 }
 0x299   :  { %1692 = vmatmul.mubr.msk.bf16.gmra.mrb[12].mxu1 %vm1354_vm9, %v1756_v5 }
 0x29b   :  { %v1307_v1 = vpop.permute.xlu1 %1306 }
 0x29c   :  { %v1312_v20 = vpop.permute.xlu0 %1311 }
 0x29f   :  { %v1317_v35 = vpop.permute.xlu1 %1316 }
 0x2a0   :  { %v1322_v36 = vpop.permute.xlu0 %1321 }
 0x363   :  { %v1448_v62 = vpop.f32.mrb[8].mxu0 }
 0x364   :  { %v1701_v48 = vadd.f32 %v1448_v62, %v1307_v1  ;;  %v1450_v11 = vpop.f32.mrb[9].mxu0  ;;  %v1554_v15 = vpop.f32.mrb[8].mxu1 }
 0x365   :  { %v1702_v31 = vadd.f32 %v1450_v11, %v1307_v1  ;;  %v1709_v49 = vadd.f32 %v1554_v15, %v1307_v1  ;;  %v1452_v18 = vpop.f32.mrb[10].mxu0  ;;  %v1556_v6 = vpop.f32.mrb[9].mxu1 }
 0x366   :  { %vm1573_vm4 = vcmp.gt.f32.partialorder %v1701_v48, 0.0  ;;  %v1589_v42 = vmul.f32 0.01, %v1701_v48  ;;  %v1703_v4 = vadd.f32 %v1452_v18, %v1312_v20  ;;  %v1710_v34 = vadd.f32 %v1556_v6, %v1307_v1  ;;  %v1454_v12 = vpop.f32.mrb[11].mxu0  ;;  %v1558_v19 = vpop.f32.mrb[10].mxu1 }
 0x367   :  { %vm1574_vm2 = vcmp.gt.f32.partialorder %v1702_v31, 0.0  ;;  %v1590_v29 = vmul.f32 0.01, %v1702_v31  ;;  %vm1575_vm10 = vcmp.gt.f32.partialorder %v1709_v49, 0.0  ;;  %v1591_v10 = vmul.f32 0.01, %v1709_v49 }
 0x368   :  { %v1605_v45 = vsel %vm1573_vm4, %v1701_v48, %v1589_v42  ;;  %vm1577_vm1 = vcmp.gt.f32.partialorder %v1703_v4, 0.0  ;;  %v1593_v24 = vmul.f32 0.01, %v1703_v4  ;;  %vm1576_vm13 = vcmp.gt.f32.partialorder %v1710_v34, 0.0  ;;  %v1560_v43 = vpop.f32.mrb[11].mxu1 }
 0x369   :  { %1621 = vst [vmem:[%s2874_s5] sm:$0xff] %v1605_v45  ;;  %v1606_v57 = vsel %vm1574_vm2, %v1702_v31, %v1590_v29  ;;  %v1607_v58 = vsel %vm1575_vm10, %v1709_v49, %v1591_v10  ;;  %v1592_v13 = vmul.f32 0.01, %v1710_v34  ;;  %v1704_v2 = vadd.f32 %v1454_v12, %v1312_v20 }
 0x36a   :  { %1622 = vst [vmem:[%s2874_s5 + $0x8] sm:$0xff] %v1606_v57  ;;  %1693 = vst [vmem:[%s2874_s5 + $0x40] sm:$0xff] %v1607_v58  ;;  %v1609_v14 = vsel %vm1577_vm1, %v1703_v4, %v1593_v24  ;;  %v1711_v40 = vadd.f32 %v1558_v19, %v1312_v20  ;;  %v1712_v30 = vadd.f32 %v1560_v43, %v1312_v20 }
 0x36b   :  { %1623 = vst [vmem:[%s2874_s5 + $0x10] sm:$0xff] %v1609_v14  ;;  %v1608_v54 = vsel %vm1576_vm13, %v1710_v34, %v1592_v13  ;;  %vm1578_vm8 = vcmp.gt.f32.partialorder %v1704_v2, 0.0  ;;  %v1594_v22 = vmul.f32 0.01, %v1704_v2  ;;  %v1458_v23 = vpop.f32.mrb[12].mxu0 }
 0x36c   :  { %1694 = vst [vmem:[%s2874_s5 + $0x48] sm:$0xff] %v1608_v54  ;;  %vm1579_vm12 = vcmp.gt.f32.partialorder %v1711_v40, 0.0  ;;  %v1595_v27 = vmul.f32 0.01, %v1711_v40  ;;  %vm1580_vm3 = vcmp.gt.f32.partialorder %v1712_v30, 0.0  ;;  %v1705_v61 = vadd.f32 %v1458_v23, %v1317_v35  ;;  %v1460_v44 = vpop.f32.mrb[13].mxu0 }
 0x36d   :  { %v1596_v0 = vmul.f32 0.01, %v1712_v30  ;;  %v1610_v28 = vsel %vm1578_vm8, %v1704_v2, %v1594_v22  ;;  %v1564_v37 = vpop.f32.mrb[12].mxu1  ;;  %v1706_v50 = vadd.f32 %v1460_v44, %v1317_v35  ;;  %v1462_v52 = vpop.f32.mrb[14].mxu0 }
 0x36e   :  { %1624 = vst [vmem:[%s2874_s5 + $0x18] sm:$0xff] %v1610_v28  ;;  %v1611_v26 = vsel %vm1579_vm12, %v1711_v40, %v1595_v27  ;;  %v1713_v25 = vadd.f32 %v1564_v37, %v1317_v35  ;;  %v1566_v63 = vpop.f32.mrb[13].mxu1  ;;  %vm1581_vm7 = vcmp.gt.f32.partialorder %v1705_v61, 0.0  ;;  %v1597_v38 = vmul.f32 0.01, %v1705_v61  ;;  %v1464_v21 = vpop.f32.mrb[15].mxu0 }
 0x36f   :  { %v1612_v33 = vsel %vm1580_vm3, %v1712_v30, %v1596_v0  ;;  %1695 = vst [vmem:[%s2874_s5 + $0x50] sm:$0xff] %v1611_v26  ;;  %v1707_v53 = vadd.f32 %v1462_v52, %v1322_v36  ;;  %v1714_v17 = vadd.f32 %v1566_v63, %v1317_v35  ;;  %v1568_v39 = vpop.f32.mrb[14].mxu1  ;;  %vm1582_vm11 = vcmp.gt.f32.partialorder %v1706_v50, 0.0 }
 0x370   :  { %1696 = vst [vmem:[%s2874_s5 + $0x58] sm:$0xff] %v1612_v33  ;;  %v1598_v41 = vmul.f32 0.01, %v1706_v50  ;;  %vm1583_vm6 = vcmp.gt.f32.partialorder %v1713_v25, 0.0  ;;  %v1599_v55 = vmul.f32 0.01, %v1713_v25  ;;  %v1613_v47 = vsel %vm1581_vm7, %v1705_v61, %v1597_v38 }
 0x371   :  { %vm1585_vm5 = vcmp.gt.f32.partialorder %v1707_v53, 0.0  ;;  %v1601_v7 = vmul.f32 0.01, %v1707_v53  ;;  %vm1584_vm14 = vcmp.gt.f32.partialorder %v1714_v17, 0.0  ;;  %v1570_v51 = vpop.f32.mrb[15].mxu1  ;;  %1625 = vst [vmem:[%s2874_s5 + $0x20] sm:$0xff] %v1613_v47  ;;  %v1708_v59 = vadd.f32 %v1464_v21, %v1322_v36 }
 0x372   :  { %v1614_v8 = vsel %vm1582_vm11, %v1706_v50, %v1598_v41  ;;  %v1615_v16 = vsel %vm1583_vm6, %v1713_v25, %v1599_v55  ;;  %v1600_v3 = vmul.f32 0.01, %v1714_v17  ;;  %v1715_v60 = vadd.f32 %v1568_v39, %v1322_v36 }
 0x373   :  { %1626 = vst [vmem:[%s2874_s5 + $0x28] sm:$0xff] %v1614_v8  ;;  %1697 = vst [vmem:[%s2874_s5 + $0x60] sm:$0xff] %v1615_v16  ;;  %v1617_v32 = vsel %vm1585_vm5, %v1707_v53, %v1601_v7  ;;  %v1716_v46 = vadd.f32 %v1570_v51, %v1322_v36  ;;  %vm1586_vm15 = vcmp.gt.f32.partialorder %v1708_v59, 0.0  ;;  %v1602_v56 = vmul.f32 0.01, %v1708_v59 }
 0x374   :  { %1627 = vst [vmem:[%s2874_s5 + $0x30] sm:$0xff] %v1617_v32  ;;  %v1616_v9 = vsel %vm1584_vm14, %v1714_v17, %v1600_v3  ;;  %vm1587_vm0 = vcmp.gt.f32.partialorder %v1715_v60, 0.0  ;;  %v1603_v5 = vmul.f32 0.01, %v1715_v60 }
 0x375   :  { %1698 = vst [vmem:[%s2874_s5 + $0x68] sm:$0xff] %v1616_v9  ;;  %vm1588_vm9 = vcmp.gt.f32.partialorder %v1716_v46, 0.0  ;;  %v1604_v1 = vmul.f32 0.01, %v1716_v46  ;;  %v1618_v20 = vsel %vm1586_vm15, %v1708_v59, %v1602_v56 }
 0x376   :  { %1628 = vst [vmem:[%s2874_s5 + $0x38] sm:$0xff] %v1618_v20  ;;  %v1619_v62 = vsel %vm1587_vm0, %v1715_v60, %v1603_v5 }
 0x377   :  { %v1620_v48 = vsel %vm1588_vm9, %v1716_v46, %v1604_v1  ;;  %1699 = vst [vmem:[%s2874_s5 + $0x70] sm:$0xff] %v1619_v62 }
 0x378   :  { %1700 = vst [vmem:[%s2874_s5 + $0x78] sm:$0xff] %v1620_v48 }

</bundles_post_ra>
